<compile_context>
chip_gen: v6e
topology: v6e:2x2x1
jax: 0.10.0
libtpu: 0.0.40
codegen_flags: <defaults>
</compile_context>

<pallas_src>
import functools

import jax
import jax.numpy as jnp
from jax.experimental import pallas as pl
from jax.experimental.pallas import tpu as pltpu

# ----------------------------- config (args) ---------------------------------
BATCH = 2
SEQ = 8
HIDDEN = 32
HEADS = 4
HEAD_DIM = HIDDEN // HEADS
FFN = 64
LAYERS = 2
LABELS = 4
VOCAB = 64
SEGMENTS = 3
POOLING = "mean"      # args.pooling  ('mean' | 'max' | 'last' | 'first')
NO_VM = True          # args.no_vm -> use_vm = False, vm = None

LANE = 128                                  # lane width / packed-slab column count
W_ROWS_PER_LAYER = 3 * HIDDEN + FFN         # wqkv(H) + wo(H) + w_ff1(H) + w_ff2(FFN)
P_ROWS_PER_LAYER = 8                        # bqkv,bo,ln1g,ln1b,bff1,bff2,ln2g,ln2b
W_HEAD_BASE = LAYERS * W_ROWS_PER_LAYER     # 320
P_HEAD_BASE = LAYERS * P_ROWS_PER_LAYER     # 16


# --------------------------- in-kernel helpers --------------------------------
def _layer_norm(x, g, b, eps=1e-6):
    # eps=1e-6 matches UER-py LayerNorm (HF BERT would be 1e-12).
    mu = jnp.mean(x, axis=-1, keepdims=True)
    var = jnp.mean((x - mu) ** 2, axis=-1, keepdims=True)
    return g * (x - mu) * jax.lax.rsqrt(var + eps) + b


def _gelu(x):
    # TODO(synk): tanh-approx GELU; PyTorch nn.GELU default is the erf form.
    return 0.5 * x * (1.0 + jnp.tanh(0.7978845608028654 * (x + 0.044715 * x ** 3)))


# --------------------------- fused forward kernel ------------------------------
def bert_fused_kernel(label_ref,            # scalar prefetch (SMEM) [B] int32
                      emb_ref,              # [1, S, H] f32 (this batch element)
                      bias_ref,              # [1, 1, S] f32 additive attention bias
                      w_ref,                 # [384, 128] bf16 packed weight slab
                      p_ref,                 # [24, 128]  f32  packed bias/LN slab
                      out_ref,               # [1, 8, 128] f32 lane-dense output
                      *, pooling):
    b = pl.program_id(0)
    S, H, F, L = SEQ, HIDDEN, FFN, LABELS
    bf = jnp.bfloat16

    x = emb_ref[...].reshape(S, H)                          # f32 activations [S, H]
    # Hoisted once (JAX does not CSE broadcast_in_dim): bias -> [HEADS, S, S].
    attn_bias = jnp.broadcast_to(bias_ref[...].reshape(1, 1, S), (HEADS, S, S))

    for layer in range(LAYERS):
        wb = layer * W_ROWS_PER_LAYER
        pb = layer * P_ROWS_PER_LAYER

        # ----- self attention: fused QKV matmul, all heads in one batched einsum -----
        qkv = jnp.dot(x.astype(bf), w_ref[wb:wb + H, :3 * H],
                      preferred_element_type=jnp.float32) + p_ref[pb + 0, :3 * H]
        qkv = qkv.astype(bf)                                # single cast feeds q/k/v
        q = qkv[:, 0 * H:1 * H].reshape(S, HEADS, HEAD_DIM)  # scale folded into Wq/bq
        k = qkv[:, 1 * H:2 * H].reshape(S, HEADS, HEAD_DIM)
        v = qkv[:, 2 * H:3 * H].reshape(S, HEADS, HEAD_DIM)
        s = jnp.einsum("qhd,khd->hqk", q, k,
                       preferred_element_type=jnp.float32) + attn_bias   # [HEADS,S,S]
        m = jnp.max(s, axis=-1, keepdims=True)
        e = jnp.exp(s - m)
        p = e * pl.reciprocal(jnp.sum(e, axis=-1, keepdims=True), approx=False)
        ctx = jnp.einsum("hqk,khd->qhd", p.astype(bf), v,
                         preferred_element_type=jnp.float32).reshape(S, H)
        attn_out = jnp.dot(ctx.astype(bf), w_ref[wb + H:wb + 2 * H, :H],
                           preferred_element_type=jnp.float32) + p_ref[pb + 1, :H]
        x = _layer_norm(x + attn_out, p_ref[pb + 2, :H], p_ref[pb + 3, :H])

        # ----- feed-forward -----
        ff = jnp.dot(x.astype(bf), w_ref[wb + 2 * H:wb + 3 * H, :F],
                     preferred_element_type=jnp.float32) + p_ref[pb + 4, :F]
        ff = _gelu(ff)
        ff = jnp.dot(ff.astype(bf), w_ref[wb + 3 * H:wb + 3 * H + F, :H],
                     preferred_element_type=jnp.float32) + p_ref[pb + 5, :H]
        x = _layer_norm(x + ff, p_ref[pb + 6, :H], p_ref[pb + 7, :H])

    # ----- pooling + classifier head -----
    if pooling == "mean":
        pooled = jnp.mean(x, axis=0, keepdims=True)         # [1, H]
    elif pooling == "max":
        pooled = jnp.max(x, axis=0, keepdims=True)
    elif pooling == "last":
        pooled = x[S - 1:S, :]
    else:  # 'first'
        pooled = x[0:1, :]

    hid = jnp.tanh(
        jnp.dot(pooled.astype(bf), w_ref[W_HEAD_BASE:W_HEAD_BASE + H, :H],
                preferred_element_type=jnp.float32) + p_ref[P_HEAD_BASE, :H])
    logits = jnp.dot(hid.astype(bf), w_ref[W_HEAD_BASE + H:W_HEAD_BASE + 2 * H, :L],
                     preferred_element_type=jnp.float32) + p_ref[P_HEAD_BASE + 1, :L]

    # LogSoftmax(dim=-1) + per-example NLL (labels read from SMEM prefetch).
    mx = jnp.max(logits, axis=-1, keepdims=True)
    lse = mx + jnp.log(jnp.sum(jnp.exp(logits - mx), axis=-1, keepdims=True))
    logp = logits - lse                                      # [1, L]
    lbl = label_ref[b]
    onehot = jax.lax.broadcasted_iota(jnp.int32, (1, L), 1) == lbl
    nll = -jnp.sum(jnp.where(onehot, logp, 0.0), axis=-1, keepdims=True)  # [1, 1]

    # Lane-dense 128-wide row: lanes [0, L) = logits, lane L = per-example NLL.
    lane = jax.lax.broadcasted_iota(jnp.int32, (1, LANE), 1)
    row = jnp.concatenate([logits, jnp.zeros((1, LANE - L), jnp.float32)], axis=-1)
    row = jnp.where(lane == L, nll, row)
    out_ref[...] = jnp.broadcast_to(row, (8, LANE)).reshape(1, 8, LANE)


def pallas_bert_classifier(label, emb, attn_bias, wslab, pslab, pooling):
    B, S, H = emb.shape
    kernel = functools.partial(bert_fused_kernel, pooling=pooling)

    grid_spec = pltpu.PrefetchScalarGridSpec(
        num_scalar_prefetch=1,                    # labels -> SMEM
        grid=(B,),                                # one batch element per program
        in_specs=[
            pl.BlockSpec((1, S, H), lambda b, *_: (b, 0, 0)),        # embeddings
            pl.BlockSpec((1, 1, S), lambda b, *_: (b, 0, 0)),        # attention bias
            pl.BlockSpec(wslab.shape, lambda b, *_: (0, 0)),         # bf16 weight slab
            pl.BlockSpec(pslab.shape, lambda b, *_: (0, 0)),         # f32 bias/LN slab
        ],
        out_specs=pl.BlockSpec((1, 8, LANE), lambda b, *_: (b, 0, 0)),
    )

    out = pl.pallas_call(
        kernel,
        grid_spec=grid_spec,
        out_shape=jax.ShapeDtypeStruct((B, 8, LANE), jnp.float32),
        compiler_params=pltpu.CompilerParams(
            dimension_semantics=("parallel",)),   # v7x: one batch element per TC
    )(label, emb, attn_bias, wslab, pslab)

    logits = out[:, 0, :LABELS]
    loss = jnp.mean(out[:, 0, LABELS])            # nn.NLLLoss(reduction='mean')
    return loss, logits


# --------------------------- params (synthetic BERT) ---------------------------
def init_params(key):
    ks = iter(jax.random.split(key, 64))
    s = 0.02

    def dense(kin, kout):
        return (s * jax.random.normal(next(ks), (kin, kout), jnp.float32),
                jnp.zeros((kout,), jnp.float32))

    p = {
        "word_emb": s * jax.random.normal(next(ks), (VOCAB, HIDDEN), jnp.float32),
        "pos_emb": s * jax.random.normal(next(ks), (SEQ, HIDDEN), jnp.float32),
        "seg_emb": s * jax.random.normal(next(ks), (SEGMENTS, HIDDEN), jnp.float32),
        "emb_ln_g": jnp.ones((HIDDEN,), jnp.float32),
        "emb_ln_b": jnp.zeros((HIDDEN,), jnp.float32),
        "layers": [],
    }
    for _ in range(LAYERS):
        lyr = {}
        lyr["wq"], lyr["bq"] = dense(HIDDEN, HIDDEN)
        lyr["wk"], lyr["bk"] = dense(HIDDEN, HIDDEN)
        lyr["wv"], lyr["bv"] = dense(HIDDEN, HIDDEN)
        lyr["wo"], lyr["bo"] = dense(HIDDEN, HIDDEN)
        lyr["w_ff1"], lyr["b_ff1"] = dense(HIDDEN, FFN)
        lyr["w_ff2"], lyr["b_ff2"] = dense(FFN, HIDDEN)
        lyr["ln1_g"] = jnp.ones((HIDDEN,), jnp.float32)
        lyr["ln1_b"] = jnp.zeros((HIDDEN,), jnp.float32)
        lyr["ln2_g"] = jnp.ones((HIDDEN,), jnp.float32)
        lyr["ln2_b"] = jnp.zeros((HIDDEN,), jnp.float32)
        p["layers"].append(lyr)

    p["out1_w"], p["out1_b"] = dense(HIDDEN, HIDDEN)   # output_layer_1
    p["out2_w"], p["out2_b"] = dense(HIDDEN, LABELS)   # output_layer_2
    return p


def pack_params(p):
    """Pack all weights into one bf16 slab and all biases/LN params into one f32 slab.

    bf16 weight slab [384, 128] (rows per layer: wqkv H, wo H, w_ff1 H, w_ff2 FFN;
    then out1_w H, out2_w H).  f32 param slab [24, 128], one parameter per row.
    The 1/sqrt(HEAD_DIM) attention scale is folded into Wq / bq.
    NOTE: matmul weights are bf16 (MXU), vs. f32 in the PyTorch reference.
    """
    bf = jnp.bfloat16
    scale = 1.0 / (HEAD_DIM ** 0.5)

    def pad_cols(w):
        r, c = w.shape
        return jnp.concatenate([w, jnp.zeros((r, LANE - c), w.dtype)], axis=1)

    def pad_row(v):
        return jnp.concatenate([v, jnp.zeros((LANE - v.shape[0],), jnp.float32)])

    w_blocks, p_rows = [], []
    for l in p["layers"]:
        wqkv = jnp.concatenate([l["wq"] * scale, l["wk"], l["wv"]], axis=1)  # [H, 3H]
        bqkv = jnp.concatenate([l["bq"] * scale, l["bk"], l["bv"]])          # [3H]
        w_blocks += [pad_cols(wqkv), pad_cols(l["wo"]),
                     pad_cols(l["w_ff1"]), pad_cols(l["w_ff2"])]
        p_rows += [bqkv, l["bo"], l["ln1_g"], l["ln1_b"],
                   l["b_ff1"], l["b_ff2"], l["ln2_g"], l["ln2_b"]]
    w_blocks += [pad_cols(p["out1_w"]), pad_cols(p["out2_w"])]
    p_rows += [p["out1_b"], p["out2_b"]]

    wslab = jnp.concatenate(w_blocks, axis=0).astype(bf)          # [384, 128] bf16
    pslab = jnp.stack([pad_row(v) for v in p_rows])               # [18, 128] f32
    pad = (-pslab.shape[0]) % 8
    if pad:
        pslab = jnp.concatenate([pslab, jnp.zeros((pad, LANE), jnp.float32)])
    return wslab, pslab


# ------------------------------- JAX glue --------------------------------------
def bert_embedding(params, src, mask, pos):
    # word + position + segment embeddings, then LayerNorm (eval: no dropout).
    # TODO(synk): embedding gather stays in JAX (no clean Pallas gather path).
    emb = (params["word_emb"][src]
           + params["pos_emb"][pos]
           + params["seg_emb"][mask])
    mu = jnp.mean(emb, axis=-1, keepdims=True)
    var = jnp.mean((emb - mu) ** 2, axis=-1, keepdims=True)
    return params["emb_ln_g"] * (emb - mu) / jnp.sqrt(var + 1e-6) + params["emb_ln_b"]


def bert_classifier_forward(params, wslab, pslab, src, label, mask, pos=None, vm=None):
    """Mirrors BertClassifier.forward: returns (loss, logits)."""
    if pos is None:
        pos = jnp.broadcast_to(jnp.arange(SEQ, dtype=jnp.int32), src.shape)
    emb = bert_embedding(params, src, mask, pos)

    use_vm = not NO_VM
    if not use_vm:
        vm = None
    # TODO(synk): visible-matrix (vm) attention path unused since use_vm=False.
    attn_bias = jnp.where(mask > 0, 0.0, -1e9).astype(jnp.float32)[:, None, :]  # [B,1,S]

    loss, logits = pallas_bert_classifier(
        label.astype(jnp.int32), emb, attn_bias, wslab, pslab, POOLING)
    return loss, logits


# ---------------------------------- main ----------------------------------------
if __name__ == "__main__":
    key = jax.random.PRNGKey(0)
    k_param, k_src, k_label = jax.random.split(key, 3)

    params = init_params(k_param)
    wslab, pslab = pack_params(params)

    src = jax.random.randint(k_src, (BATCH, SEQ), 0, VOCAB, dtype=jnp.int32)
    label = jax.random.randint(k_label, (BATCH,), 0, LABELS, dtype=jnp.int32)
    # segment/visibility mask: all tokens visible, segment id 1
    mask = jnp.ones((BATCH, SEQ), dtype=jnp.int32)

    fwd = jax.jit(lambda s, l, m: bert_classifier_forward(params, wslab, pslab, s, l, m))
    loss, logits = fwd(src, label, mask)
    jax.block_until_ready((loss, logits))

    assert logits.shape == (BATCH, LABELS)
    assert loss.shape == ()
    assert bool(jnp.isfinite(loss))
    print("KERNEL_OK")
</pallas_src>

<mosaic_0001>
module attributes {stable_mosaic.version = 11 : i64} {
  func.func @bert_fused_kernel(%arg0: i32, %arg1: memref<2xi32, #tpu.memory_space<smem>>, %arg2: memref<1x8x32xf32, #tpu.memory_space<vmem>>, %arg3: memref<1x1x8xf32, #tpu.memory_space<vmem>>, %arg4: memref<384x128xbf16, #tpu.memory_space<vmem>>, %arg5: memref<24x128xf32, #tpu.memory_space<vmem>>, %arg6: memref<1x8x128xf32, #tpu.memory_space<vmem>>) attributes {dimension_semantics = [#tpu.dimension_semantics<parallel>], iteration_bounds = array<i64: 2>, scalar_prefetch = 1 : i64, scratch_operands = 0 : i64, tpu.core_type = #tpu.core_type<tc>, window_params = [{transform_indices = @transform_0, window_bounds = array<i64: 1, 8, 32>}, {transform_indices = @transform_1, window_bounds = array<i64: 1, 1, 8>}, {pipeline_mode = #tpu.pipeline_mode<synchronous>, transform_indices = @transform_2, window_bounds = array<i64: 384, 128>}, {pipeline_mode = #tpu.pipeline_mode<synchronous>, transform_indices = @transform_3, window_bounds = array<i64: 24, 128>}, {transform_indices = @transform_4, window_bounds = array<i64: 1, 8, 128>}]} {
    %c0 = arith.constant 0 : index
    %c0_0 = arith.constant 0 : index
    %c0_1 = arith.constant 0 : index
    %0 = vector.load %arg2[%c0, %c0_0, %c0_1] : memref<1x8x32xf32, #tpu.memory_space<vmem>>, vector<1x8x32xf32>
    %1 = vector.shape_cast %0 : vector<1x8x32xf32> to vector<8x32xf32>
    %c0_2 = arith.constant 0 : index
    %c0_3 = arith.constant 0 : index
    %c0_4 = arith.constant 0 : index
    %2 = vector.load %arg3[%c0_2, %c0_3, %c0_4] : memref<1x1x8xf32, #tpu.memory_space<vmem>>, vector<1x1x8xf32>
    %3 = vector.shape_cast %2 : vector<1x1x8xf32> to vector<1x1x8xf32>
    %4 = vector.broadcast %3 : vector<1x1x8xf32> to vector<4x8x8xf32>
    %5 = arith.truncf %1 : vector<8x32xf32> to vector<8x32xbf16>
    %c0_5 = arith.constant 0 : index
    %c0_6 = arith.constant 0 : index
    %6 = vector.load %arg4[%c0_5, %c0_6] : memref<384x128xbf16, #tpu.memory_space<vmem>>, vector<32x96xbf16>
    %cst = arith.constant dense<0.000000e+00> : vector<8x96xf32>
    %7 = tpu.matmul %5, %6, %cst {dimension_numbers = #tpu.dot_dimension_numbers<[1], [0], [0], [1], [0, 0, 1, 1], [], []>} : vector<8x32xbf16>, vector<32x96xbf16>, vector<8x96xf32> -> vector<8x96xf32>
    %c0_7 = arith.constant 0 : index
    %c0_8 = arith.constant 0 : index
    %8 = vector.load %arg5[%c0_7, %c0_8] : memref<24x128xf32, #tpu.memory_space<vmem>>, vector<1x96xf32>
    %9 = vector.shape_cast %8 : vector<1x96xf32> to vector<96xf32>
    %10 = vector.shape_cast %9 : vector<96xf32> to vector<1x96xf32>
    %11 = vector.broadcast %10 : vector<1x96xf32> to vector<8x96xf32>
    %12 = arith.addf %7, %11 : vector<8x96xf32>
    %13 = arith.truncf %12 : vector<8x96xf32> to vector<8x96xbf16>
    %14 = vector.extract_strided_slice %13 {offsets = [0, 0], sizes = [8, 32], strides = [1, 1]} : vector<8x96xbf16> to vector<8x32xbf16>
    %15 = vector.shape_cast %14 : vector<8x32xbf16> to vector<8x4x8xbf16>
    %16 = vector.extract_strided_slice %13 {offsets = [0, 32], sizes = [8, 32], strides = [1, 1]} : vector<8x96xbf16> to vector<8x32xbf16>
    %17 = vector.shape_cast %16 : vector<8x32xbf16> to vector<8x4x8xbf16>
    %18 = vector.extract_strided_slice %13 {offsets = [0, 64], sizes = [8, 32], strides = [1, 1]} : vector<8x96xbf16> to vector<8x32xbf16>
    %19 = vector.shape_cast %18 : vector<8x32xbf16> to vector<8x4x8xbf16>
    "tpu.trace_start"() <{level = 10 : i32, message = "qhd,khd->hqk"}> : () -> ()
    %cst_9 = arith.constant dense<0.000000e+00> : vector<4x8x8xf32>
    %20 = tpu.matmul %15, %17, %cst_9 {dimension_numbers = #tpu.dot_dimension_numbers<[2], [2], [0], [0], [0, 1, 0, 0, 1, 0], [1], [1]>} : vector<8x4x8xbf16>, vector<8x4x8xbf16>, vector<4x8x8xf32> -> vector<4x8x8xf32>
    "tpu.trace_stop"() : () -> ()
    %21 = arith.addf %20, %4 : vector<4x8x8xf32>
    %cst_10 = arith.constant dense<0xFF800000> : vector<4x8xf32>
    %22 = vector.multi_reduction <maximumf>, %21, %cst_10 [2] : vector<4x8x8xf32> to vector<4x8xf32>
    %23 = vector.shape_cast %22 : vector<4x8xf32> to vector<4x8x1xf32>
    %24 = vector.broadcast %23 : vector<4x8x1xf32> to vector<4x8x8xf32>
    %25 = arith.subf %21, %24 : vector<4x8x8xf32>
    %26 = math.exp %25 : vector<4x8x8xf32>
    %cst_11 = arith.constant dense<0.000000e+00> : vector<4x8xf32>
    %27 = vector.multi_reduction <add>, %26, %cst_11 [2] : vector<4x8x8xf32> to vector<4x8xf32>
    %28 = vector.shape_cast %27 : vector<4x8xf32> to vector<4x8x1xf32>
    %29 = tpu.reciprocal %28 : vector<4x8x1xf32> -> vector<4x8x1xf32>
    %30 = vector.broadcast %29 : vector<4x8x1xf32> to vector<4x8x8xf32>
    %31 = arith.mulf %26, %30 : vector<4x8x8xf32>
    %32 = arith.truncf %31 : vector<4x8x8xf32> to vector<4x8x8xbf16>
    "tpu.trace_start"() <{level = 10 : i32, message = "hqk,khd->qhd"}> : () -> ()
    %cst_12 = arith.constant dense<0.000000e+00> : vector<4x8x8xf32>
    %33 = tpu.matmul %19, %32, %cst_12 {dimension_numbers = #tpu.dot_dimension_numbers<[0], [2], [2], [1], [0, 1, 0, 2, 1, 1], [1], [0]>} : vector<8x4x8xbf16>, vector<4x8x8xbf16>, vector<4x8x8xf32> -> vector<4x8x8xf32>
    %34 = tpu.transpose %33, [2, 0, 1] : vector<4x8x8xf32> -> vector<8x4x8xf32>
    "tpu.trace_stop"() : () -> ()
    %35 = vector.shape_cast %34 : vector<8x4x8xf32> to vector<8x32xf32>
    %36 = arith.truncf %35 : vector<8x32xf32> to vector<8x32xbf16>
    %c32 = arith.constant 32 : index
    %c0_13 = arith.constant 0 : index
    %37 = vector.load %arg4[%c32, %c0_13] : memref<384x128xbf16, #tpu.memory_space<vmem>>, vector<32x32xbf16>
    %cst_14 = arith.constant dense<0.000000e+00> : vector<8x32xf32>
    %38 = tpu.matmul %36, %37, %cst_14 {dimension_numbers = #tpu.dot_dimension_numbers<[1], [0], [0], [1], [0, 0, 1, 1], [], []>} : vector<8x32xbf16>, vector<32x32xbf16>, vector<8x32xf32> -> vector<8x32xf32>
    %c1 = arith.constant 1 : index
    %c0_15 = arith.constant 0 : index
    %39 = vector.load %arg5[%c1, %c0_15] : memref<24x128xf32, #tpu.memory_space<vmem>>, vector<1x32xf32>
    %40 = vector.shape_cast %39 : vector<1x32xf32> to vector<32xf32>
    %41 = vector.shape_cast %40 : vector<32xf32> to vector<1x32xf32>
    %42 = vector.broadcast %41 : vector<1x32xf32> to vector<8x32xf32>
    %43 = arith.addf %38, %42 : vector<8x32xf32>
    %44 = arith.addf %1, %43 : vector<8x32xf32>
    %c2 = arith.constant 2 : index
    %c0_16 = arith.constant 0 : index
    %45 = vector.load %arg5[%c2, %c0_16] : memref<24x128xf32, #tpu.memory_space<vmem>>, vector<1x32xf32>
    %46 = vector.shape_cast %45 : vector<1x32xf32> to vector<32xf32>
    %c3 = arith.constant 3 : index
    %c0_17 = arith.constant 0 : index
    %47 = vector.load %arg5[%c3, %c0_17] : memref<24x128xf32, #tpu.memory_space<vmem>>, vector<1x32xf32>
    %48 = vector.shape_cast %47 : vector<1x32xf32> to vector<32xf32>
    %cst_18 = arith.constant dense<0.000000e+00> : vector<8xf32>
    %49 = vector.multi_reduction <add>, %44, %cst_18 [1] : vector<8x32xf32> to vector<8xf32>
    %50 = vector.shape_cast %49 : vector<8xf32> to vector<8x1xf32>
    %cst_19 = arith.constant 3.200000e+01 : f32
    %51 = vector.broadcast %cst_19 : f32 to vector<8x1xf32>
    %52 = arith.divf %50, %51 : vector<8x1xf32>
    %53 = vector.broadcast %52 : vector<8x1xf32> to vector<8x32xf32>
    %54 = arith.subf %44, %53 : vector<8x32xf32>
    %55 = arith.mulf %54, %54 : vector<8x32xf32>
    %cst_20 = arith.constant dense<0.000000e+00> : vector<8xf32>
    %56 = vector.multi_reduction <add>, %55, %cst_20 [1] : vector<8x32xf32> to vector<8xf32>
    %57 = vector.shape_cast %56 : vector<8xf32> to vector<8x1xf32>
    %cst_21 = arith.constant 3.200000e+01 : f32
    %58 = vector.broadcast %cst_21 : f32 to vector<8x1xf32>
    %59 = arith.divf %57, %58 : vector<8x1xf32>
    %60 = vector.broadcast %52 : vector<8x1xf32> to vector<8x32xf32>
    %61 = arith.subf %44, %60 : vector<8x32xf32>
    %62 = vector.shape_cast %46 : vector<32xf32> to vector<1x32xf32>
    %63 = vector.broadcast %62 : vector<1x32xf32> to vector<8x32xf32>
    %64 = arith.mulf %63, %61 : vector<8x32xf32>
    %cst_22 = arith.constant 9.99999997E-7 : f32
    %65 = vector.broadcast %cst_22 : f32 to vector<8x1xf32>
    %66 = arith.addf %59, %65 : vector<8x1xf32>
    %67 = math.rsqrt %66 : vector<8x1xf32>
    %68 = vector.broadcast %67 : vector<8x1xf32> to vector<8x32xf32>
    %69 = arith.mulf %64, %68 : vector<8x32xf32>
    %70 = vector.shape_cast %48 : vector<32xf32> to vector<1x32xf32>
    %71 = vector.broadcast %70 : vector<1x32xf32> to vector<8x32xf32>
    %72 = arith.addf %69, %71 : vector<8x32xf32>
    %73 = arith.truncf %72 : vector<8x32xf32> to vector<8x32xbf16>
    %c64 = arith.constant 64 : index
    %c0_23 = arith.constant 0 : index
    %74 = vector.load %arg4[%c64, %c0_23] : memref<384x128xbf16, #tpu.memory_space<vmem>>, vector<32x64xbf16>
    %cst_24 = arith.constant dense<0.000000e+00> : vector<8x64xf32>
    %75 = tpu.matmul %73, %74, %cst_24 {dimension_numbers = #tpu.dot_dimension_numbers<[1], [0], [0], [1], [0, 0, 1, 1], [], []>} : vector<8x32xbf16>, vector<32x64xbf16>, vector<8x64xf32> -> vector<8x64xf32>
    %c4 = arith.constant 4 : index
    %c0_25 = arith.constant 0 : index
    %76 = vector.load %arg5[%c4, %c0_25] : memref<24x128xf32, #tpu.memory_space<vmem>>, vector<1x64xf32>
    %77 = vector.shape_cast %76 : vector<1x64xf32> to vector<64xf32>
    %78 = vector.shape_cast %77 : vector<64xf32> to vector<1x64xf32>
    %79 = vector.broadcast %78 : vector<1x64xf32> to vector<8x64xf32>
    %80 = arith.addf %75, %79 : vector<8x64xf32>
    %cst_26 = arith.constant 5.000000e-01 : f32
    %81 = vector.broadcast %cst_26 : f32 to vector<8x64xf32>
    %82 = arith.mulf %81, %80 : vector<8x64xf32>
    %83 = arith.mulf %80, %80 : vector<8x64xf32>
    %84 = arith.mulf %80, %83 : vector<8x64xf32>
    %cst_27 = arith.constant 4.471500e-02 : f32
    %85 = vector.broadcast %cst_27 : f32 to vector<8x64xf32>
    %86 = arith.mulf %85, %84 : vector<8x64xf32>
    %87 = arith.addf %80, %86 : vector<8x64xf32>
    %cst_28 = arith.constant 0.797884583 : f32
    %88 = vector.broadcast %cst_28 : f32 to vector<8x64xf32>
    %89 = arith.mulf %88, %87 : vector<8x64xf32>
    %90 = math.tanh %89 : vector<8x64xf32>
    %cst_29 = arith.constant 1.000000e+00 : f32
    %91 = vector.broadcast %cst_29 : f32 to vector<8x64xf32>
    %92 = arith.addf %91, %90 : vector<8x64xf32>
    %93 = arith.mulf %82, %92 : vector<8x64xf32>
    %94 = arith.truncf %93 : vector<8x64xf32> to vector<8x64xbf16>
    %c96 = arith.constant 96 : index
    %c0_30 = arith.constant 0 : index
    %95 = vector.load %arg4[%c96, %c0_30] : memref<384x128xbf16, #tpu.memory_space<vmem>>, vector<64x32xbf16>
    %cst_31 = arith.constant dense<0.000000e+00> : vector<8x32xf32>
    %96 = tpu.matmul %94, %95, %cst_31 {dimension_numbers = #tpu.dot_dimension_numbers<[1], [0], [0], [1], [0, 0, 1, 1], [], []>} : vector<8x64xbf16>, vector<64x32xbf16>, vector<8x32xf32> -> vector<8x32xf32>
    %c5 = arith.constant 5 : index
    %c0_32 = arith.constant 0 : index
    %97 = vector.load %arg5[%c5, %c0_32] : memref<24x128xf32, #tpu.memory_space<vmem>>, vector<1x32xf32>
    %98 = vector.shape_cast %97 : vector<1x32xf32> to vector<32xf32>
    %99 = vector.shape_cast %98 : vector<32xf32> to vector<1x32xf32>
    %100 = vector.broadcast %99 : vector<1x32xf32> to vector<8x32xf32>
    %101 = arith.addf %96, %100 : vector<8x32xf32>
    %102 = arith.addf %72, %101 : vector<8x32xf32>
    %c6 = arith.constant 6 : index
    %c0_33 = arith.constant 0 : index
    %103 = vector.load %arg5[%c6, %c0_33] : memref<24x128xf32, #tpu.memory_space<vmem>>, vector<1x32xf32>
    %104 = vector.shape_cast %103 : vector<1x32xf32> to vector<32xf32>
    %c7 = arith.constant 7 : index
    %c0_34 = arith.constant 0 : index
    %105 = vector.load %arg5[%c7, %c0_34] : memref<24x128xf32, #tpu.memory_space<vmem>>, vector<1x32xf32>
    %106 = vector.shape_cast %105 : vector<1x32xf32> to vector<32xf32>
    %cst_35 = arith.constant dense<0.000000e+00> : vector<8xf32>
    %107 = vector.multi_reduction <add>, %102, %cst_35 [1] : vector<8x32xf32> to vector<8xf32>
    %108 = vector.shape_cast %107 : vector<8xf32> to vector<8x1xf32>
    %cst_36 = arith.constant 3.200000e+01 : f32
    %109 = vector.broadcast %cst_36 : f32 to vector<8x1xf32>
    %110 = arith.divf %108, %109 : vector<8x1xf32>
    %111 = vector.broadcast %110 : vector<8x1xf32> to vector<8x32xf32>
    %112 = arith.subf %102, %111 : vector<8x32xf32>
    %113 = arith.mulf %112, %112 : vector<8x32xf32>
    %cst_37 = arith.constant dense<0.000000e+00> : vector<8xf32>
    %114 = vector.multi_reduction <add>, %113, %cst_37 [1] : vector<8x32xf32> to vector<8xf32>
    %115 = vector.shape_cast %114 : vector<8xf32> to vector<8x1xf32>
    %cst_38 = arith.constant 3.200000e+01 : f32
    %116 = vector.broadcast %cst_38 : f32 to vector<8x1xf32>
    %117 = arith.divf %115, %116 : vector<8x1xf32>
    %118 = vector.broadcast %110 : vector<8x1xf32> to vector<8x32xf32>
    %119 = arith.subf %102, %118 : vector<8x32xf32>
    %120 = vector.shape_cast %104 : vector<32xf32> to vector<1x32xf32>
    %121 = vector.broadcast %120 : vector<1x32xf32> to vector<8x32xf32>
    %122 = arith.mulf %121, %119 : vector<8x32xf32>
    %cst_39 = arith.constant 9.99999997E-7 : f32
    %123 = vector.broadcast %cst_39 : f32 to vector<8x1xf32>
    %124 = arith.addf %117, %123 : vector<8x1xf32>
    %125 = math.rsqrt %124 : vector<8x1xf32>
    %126 = vector.broadcast %125 : vector<8x1xf32> to vector<8x32xf32>
    %127 = arith.mulf %122, %126 : vector<8x32xf32>
    %128 = vector.shape_cast %106 : vector<32xf32> to vector<1x32xf32>
    %129 = vector.broadcast %128 : vector<1x32xf32> to vector<8x32xf32>
    %130 = arith.addf %127, %129 : vector<8x32xf32>
    %131 = arith.truncf %130 : vector<8x32xf32> to vector<8x32xbf16>
    %c160 = arith.constant 160 : index
    %c0_40 = arith.constant 0 : index
    %132 = vector.load %arg4[%c160, %c0_40] : memref<384x128xbf16, #tpu.memory_space<vmem>>, vector<32x96xbf16>
    %cst_41 = arith.constant dense<0.000000e+00> : vector<8x96xf32>
    %133 = tpu.matmul %131, %132, %cst_41 {dimension_numbers = #tpu.dot_dimension_numbers<[1], [0], [0], [1], [0, 0, 1, 1], [], []>} : vector<8x32xbf16>, vector<32x96xbf16>, vector<8x96xf32> -> vector<8x96xf32>
    %c8 = arith.constant 8 : index
    %c0_42 = arith.constant 0 : index
    %134 = vector.load %arg5[%c8, %c0_42] : memref<24x128xf32, #tpu.memory_space<vmem>>, vector<1x96xf32>
    %135 = vector.shape_cast %134 : vector<1x96xf32> to vector<96xf32>
    %136 = vector.shape_cast %135 : vector<96xf32> to vector<1x96xf32>
    %137 = vector.broadcast %136 : vector<1x96xf32> to vector<8x96xf32>
    %138 = arith.addf %133, %137 : vector<8x96xf32>
    %139 = arith.truncf %138 : vector<8x96xf32> to vector<8x96xbf16>
    %140 = vector.extract_strided_slice %139 {offsets = [0, 0], sizes = [8, 32], strides = [1, 1]} : vector<8x96xbf16> to vector<8x32xbf16>
    %141 = vector.shape_cast %140 : vector<8x32xbf16> to vector<8x4x8xbf16>
    %142 = vector.extract_strided_slice %139 {offsets = [0, 32], sizes = [8, 32], strides = [1, 1]} : vector<8x96xbf16> to vector<8x32xbf16>
    %143 = vector.shape_cast %142 : vector<8x32xbf16> to vector<8x4x8xbf16>
    %144 = vector.extract_strided_slice %139 {offsets = [0, 64], sizes = [8, 32], strides = [1, 1]} : vector<8x96xbf16> to vector<8x32xbf16>
    %145 = vector.shape_cast %144 : vector<8x32xbf16> to vector<8x4x8xbf16>
    "tpu.trace_start"() <{level = 10 : i32, message = "qhd,khd->hqk"}> : () -> ()
    %cst_43 = arith.constant dense<0.000000e+00> : vector<4x8x8xf32>
    %146 = tpu.matmul %141, %143, %cst_43 {dimension_numbers = #tpu.dot_dimension_numbers<[2], [2], [0], [0], [0, 1, 0, 0, 1, 0], [1], [1]>} : vector<8x4x8xbf16>, vector<8x4x8xbf16>, vector<4x8x8xf32> -> vector<4x8x8xf32>
    "tpu.trace_stop"() : () -> ()
    %147 = arith.addf %146, %4 : vector<4x8x8xf32>
    %cst_44 = arith.constant dense<0xFF800000> : vector<4x8xf32>
    %148 = vector.multi_reduction <maximumf>, %147, %cst_44 [2] : vector<4x8x8xf32> to vector<4x8xf32>
    %149 = vector.shape_cast %148 : vector<4x8xf32> to vector<4x8x1xf32>
    %150 = vector.broadcast %149 : vector<4x8x1xf32> to vector<4x8x8xf32>
    %151 = arith.subf %147, %150 : vector<4x8x8xf32>
    %152 = math.exp %151 : vector<4x8x8xf32>
    %cst_45 = arith.constant dense<0.000000e+00> : vector<4x8xf32>
    %153 = vector.multi_reduction <add>, %152, %cst_45 [2] : vector<4x8x8xf32> to vector<4x8xf32>
    %154 = vector.shape_cast %153 : vector<4x8xf32> to vector<4x8x1xf32>
    %155 = tpu.reciprocal %154 : vector<4x8x1xf32> -> vector<4x8x1xf32>
    %156 = vector.broadcast %155 : vector<4x8x1xf32> to vector<4x8x8xf32>
    %157 = arith.mulf %152, %156 : vector<4x8x8xf32>
    %158 = arith.truncf %157 : vector<4x8x8xf32> to vector<4x8x8xbf16>
    "tpu.trace_start"() <{level = 10 : i32, message = "hqk,khd->qhd"}> : () -> ()
    %cst_46 = arith.constant dense<0.000000e+00> : vector<4x8x8xf32>
    %159 = tpu.matmul %145, %158, %cst_46 {dimension_numbers = #tpu.dot_dimension_numbers<[0], [2], [2], [1], [0, 1, 0, 2, 1, 1], [1], [0]>} : vector<8x4x8xbf16>, vector<4x8x8xbf16>, vector<4x8x8xf32> -> vector<4x8x8xf32>
    %160 = tpu.transpose %159, [2, 0, 1] : vector<4x8x8xf32> -> vector<8x4x8xf32>
    "tpu.trace_stop"() : () -> ()
    %161 = vector.shape_cast %160 : vector<8x4x8xf32> to vector<8x32xf32>
    %162 = arith.truncf %161 : vector<8x32xf32> to vector<8x32xbf16>
    %c192 = arith.constant 192 : index
    %c0_47 = arith.constant 0 : index
    %163 = vector.load %arg4[%c192, %c0_47] : memref<384x128xbf16, #tpu.memory_space<vmem>>, vector<32x32xbf16>
    %cst_48 = arith.constant dense<0.000000e+00> : vector<8x32xf32>
    %164 = tpu.matmul %162, %163, %cst_48 {dimension_numbers = #tpu.dot_dimension_numbers<[1], [0], [0], [1], [0, 0, 1, 1], [], []>} : vector<8x32xbf16>, vector<32x32xbf16>, vector<8x32xf32> -> vector<8x32xf32>
    %c9 = arith.constant 9 : index
    %c0_49 = arith.constant 0 : index
    %165 = vector.load %arg5[%c9, %c0_49] : memref<24x128xf32, #tpu.memory_space<vmem>>, vector<1x32xf32>
    %166 = vector.shape_cast %165 : vector<1x32xf32> to vector<32xf32>
    %167 = vector.shape_cast %166 : vector<32xf32> to vector<1x32xf32>
    %168 = vector.broadcast %167 : vector<1x32xf32> to vector<8x32xf32>
    %169 = arith.addf %164, %168 : vector<8x32xf32>
    %170 = arith.addf %130, %169 : vector<8x32xf32>
    %c10 = arith.constant 10 : index
    %c0_50 = arith.constant 0 : index
    %171 = vector.load %arg5[%c10, %c0_50] : memref<24x128xf32, #tpu.memory_space<vmem>>, vector<1x32xf32>
    %172 = vector.shape_cast %171 : vector<1x32xf32> to vector<32xf32>
    %c11 = arith.constant 11 : index
    %c0_51 = arith.constant 0 : index
    %173 = vector.load %arg5[%c11, %c0_51] : memref<24x128xf32, #tpu.memory_space<vmem>>, vector<1x32xf32>
    %174 = vector.shape_cast %173 : vector<1x32xf32> to vector<32xf32>
    %cst_52 = arith.constant dense<0.000000e+00> : vector<8xf32>
    %175 = vector.multi_reduction <add>, %170, %cst_52 [1] : vector<8x32xf32> to vector<8xf32>
    %176 = vector.shape_cast %175 : vector<8xf32> to vector<8x1xf32>
    %cst_53 = arith.constant 3.200000e+01 : f32
    %177 = vector.broadcast %cst_53 : f32 to vector<8x1xf32>
    %178 = arith.divf %176, %177 : vector<8x1xf32>
    %179 = vector.broadcast %178 : vector<8x1xf32> to vector<8x32xf32>
    %180 = arith.subf %170, %179 : vector<8x32xf32>
    %181 = arith.mulf %180, %180 : vector<8x32xf32>
    %cst_54 = arith.constant dense<0.000000e+00> : vector<8xf32>
    %182 = vector.multi_reduction <add>, %181, %cst_54 [1] : vector<8x32xf32> to vector<8xf32>
    %183 = vector.shape_cast %182 : vector<8xf32> to vector<8x1xf32>
    %cst_55 = arith.constant 3.200000e+01 : f32
    %184 = vector.broadcast %cst_55 : f32 to vector<8x1xf32>
    %185 = arith.divf %183, %184 : vector<8x1xf32>
    %186 = vector.broadcast %178 : vector<8x1xf32> to vector<8x32xf32>
    %187 = arith.subf %170, %186 : vector<8x32xf32>
    %188 = vector.shape_cast %172 : vector<32xf32> to vector<1x32xf32>
    %189 = vector.broadcast %188 : vector<1x32xf32> to vector<8x32xf32>
    %190 = arith.mulf %189, %187 : vector<8x32xf32>
    %cst_56 = arith.constant 9.99999997E-7 : f32
    %191 = vector.broadcast %cst_56 : f32 to vector<8x1xf32>
    %192 = arith.addf %185, %191 : vector<8x1xf32>
    %193 = math.rsqrt %192 : vector<8x1xf32>
    %194 = vector.broadcast %193 : vector<8x1xf32> to vector<8x32xf32>
    %195 = arith.mulf %190, %194 : vector<8x32xf32>
    %196 = vector.shape_cast %174 : vector<32xf32> to vector<1x32xf32>
    %197 = vector.broadcast %196 : vector<1x32xf32> to vector<8x32xf32>
    %198 = arith.addf %195, %197 : vector<8x32xf32>
    %199 = arith.truncf %198 : vector<8x32xf32> to vector<8x32xbf16>
    %c224 = arith.constant 224 : index
    %c0_57 = arith.constant 0 : index
    %200 = vector.load %arg4[%c224, %c0_57] : memref<384x128xbf16, #tpu.memory_space<vmem>>, vector<32x64xbf16>
    %cst_58 = arith.constant dense<0.000000e+00> : vector<8x64xf32>
    %201 = tpu.matmul %199, %200, %cst_58 {dimension_numbers = #tpu.dot_dimension_numbers<[1], [0], [0], [1], [0, 0, 1, 1], [], []>} : vector<8x32xbf16>, vector<32x64xbf16>, vector<8x64xf32> -> vector<8x64xf32>
    %c12 = arith.constant 12 : index
    %c0_59 = arith.constant 0 : index
    %202 = vector.load %arg5[%c12, %c0_59] : memref<24x128xf32, #tpu.memory_space<vmem>>, vector<1x64xf32>
    %203 = vector.shape_cast %202 : vector<1x64xf32> to vector<64xf32>
    %204 = vector.shape_cast %203 : vector<64xf32> to vector<1x64xf32>
    %205 = vector.broadcast %204 : vector<1x64xf32> to vector<8x64xf32>
    %206 = arith.addf %201, %205 : vector<8x64xf32>
    %cst_60 = arith.constant 5.000000e-01 : f32
    %207 = vector.broadcast %cst_60 : f32 to vector<8x64xf32>
    %208 = arith.mulf %207, %206 : vector<8x64xf32>
    %209 = arith.mulf %206, %206 : vector<8x64xf32>
    %210 = arith.mulf %206, %209 : vector<8x64xf32>
    %cst_61 = arith.constant 4.471500e-02 : f32
    %211 = vector.broadcast %cst_61 : f32 to vector<8x64xf32>
    %212 = arith.mulf %211, %210 : vector<8x64xf32>
    %213 = arith.addf %206, %212 : vector<8x64xf32>
    %cst_62 = arith.constant 0.797884583 : f32
    %214 = vector.broadcast %cst_62 : f32 to vector<8x64xf32>
    %215 = arith.mulf %214, %213 : vector<8x64xf32>
    %216 = math.tanh %215 : vector<8x64xf32>
    %cst_63 = arith.constant 1.000000e+00 : f32
    %217 = vector.broadcast %cst_63 : f32 to vector<8x64xf32>
    %218 = arith.addf %217, %216 : vector<8x64xf32>
    %219 = arith.mulf %208, %218 : vector<8x64xf32>
    %220 = arith.truncf %219 : vector<8x64xf32> to vector<8x64xbf16>
    %c256 = arith.constant 256 : index
    %c0_64 = arith.constant 0 : index
    %221 = vector.load %arg4[%c256, %c0_64] : memref<384x128xbf16, #tpu.memory_space<vmem>>, vector<64x32xbf16>
    %cst_65 = arith.constant dense<0.000000e+00> : vector<8x32xf32>
    %222 = tpu.matmul %220, %221, %cst_65 {dimension_numbers = #tpu.dot_dimension_numbers<[1], [0], [0], [1], [0, 0, 1, 1], [], []>} : vector<8x64xbf16>, vector<64x32xbf16>, vector<8x32xf32> -> vector<8x32xf32>
    %c13 = arith.constant 13 : index
    %c0_66 = arith.constant 0 : index
    %223 = vector.load %arg5[%c13, %c0_66] : memref<24x128xf32, #tpu.memory_space<vmem>>, vector<1x32xf32>
    %224 = vector.shape_cast %223 : vector<1x32xf32> to vector<32xf32>
    %225 = vector.shape_cast %224 : vector<32xf32> to vector<1x32xf32>
    %226 = vector.broadcast %225 : vector<1x32xf32> to vector<8x32xf32>
    %227 = arith.addf %222, %226 : vector<8x32xf32>
    %228 = arith.addf %198, %227 : vector<8x32xf32>
    %c14 = arith.constant 14 : index
    %c0_67 = arith.constant 0 : index
    %229 = vector.load %arg5[%c14, %c0_67] : memref<24x128xf32, #tpu.memory_space<vmem>>, vector<1x32xf32>
    %230 = vector.shape_cast %229 : vector<1x32xf32> to vector<32xf32>
    %c15 = arith.constant 15 : index
    %c0_68 = arith.constant 0 : index
    %231 = vector.load %arg5[%c15, %c0_68] : memref<24x128xf32, #tpu.memory_space<vmem>>, vector<1x32xf32>
    %232 = vector.shape_cast %231 : vector<1x32xf32> to vector<32xf32>
    %cst_69 = arith.constant dense<0.000000e+00> : vector<8xf32>
    %233 = vector.multi_reduction <add>, %228, %cst_69 [1] : vector<8x32xf32> to vector<8xf32>
    %234 = vector.shape_cast %233 : vector<8xf32> to vector<8x1xf32>
    %cst_70 = arith.constant 3.200000e+01 : f32
    %235 = vector.broadcast %cst_70 : f32 to vector<8x1xf32>
    %236 = arith.divf %234, %235 : vector<8x1xf32>
    %237 = vector.broadcast %236 : vector<8x1xf32> to vector<8x32xf32>
    %238 = arith.subf %228, %237 : vector<8x32xf32>
    %239 = arith.mulf %238, %238 : vector<8x32xf32>
    %cst_71 = arith.constant dense<0.000000e+00> : vector<8xf32>
    %240 = vector.multi_reduction <add>, %239, %cst_71 [1] : vector<8x32xf32> to vector<8xf32>
    %241 = vector.shape_cast %240 : vector<8xf32> to vector<8x1xf32>
    %cst_72 = arith.constant 3.200000e+01 : f32
    %242 = vector.broadcast %cst_72 : f32 to vector<8x1xf32>
    %243 = arith.divf %241, %242 : vector<8x1xf32>
    %244 = vector.broadcast %236 : vector<8x1xf32> to vector<8x32xf32>
    %245 = arith.subf %228, %244 : vector<8x32xf32>
    %246 = vector.shape_cast %230 : vector<32xf32> to vector<1x32xf32>
    %247 = vector.broadcast %246 : vector<1x32xf32> to vector<8x32xf32>
    %248 = arith.mulf %247, %245 : vector<8x32xf32>
    %cst_73 = arith.constant 9.99999997E-7 : f32
    %249 = vector.broadcast %cst_73 : f32 to vector<8x1xf32>
    %250 = arith.addf %243, %249 : vector<8x1xf32>
    %251 = math.rsqrt %250 : vector<8x1xf32>
    %252 = vector.broadcast %251 : vector<8x1xf32> to vector<8x32xf32>
    %253 = arith.mulf %248, %252 : vector<8x32xf32>
    %254 = vector.shape_cast %232 : vector<32xf32> to vector<1x32xf32>
    %255 = vector.broadcast %254 : vector<1x32xf32> to vector<8x32xf32>
    %256 = arith.addf %253, %255 : vector<8x32xf32>
    %cst_74 = arith.constant dense<0.000000e+00> : vector<32xf32>
    %257 = vector.multi_reduction <add>, %256, %cst_74 [0] : vector<8x32xf32> to vector<32xf32>
    %258 = vector.shape_cast %257 : vector<32xf32> to vector<1x32xf32>
    %cst_75 = arith.constant 8.000000e+00 : f32
    %259 = vector.broadcast %cst_75 : f32 to vector<1x32xf32>
    %260 = arith.divf %258, %259 : vector<1x32xf32>
    %261 = arith.truncf %260 : vector<1x32xf32> to vector<1x32xbf16>
    %c320 = arith.constant 320 : index
    %c0_76 = arith.constant 0 : index
    %262 = vector.load %arg4[%c320, %c0_76] : memref<384x128xbf16, #tpu.memory_space<vmem>>, vector<32x32xbf16>
    %cst_77 = arith.constant dense<0.000000e+00> : vector<1x32xf32>
    %263 = tpu.matmul %261, %262, %cst_77 {dimension_numbers = #tpu.dot_dimension_numbers<[1], [0], [0], [1], [0, 0, 1, 1], [], []>} : vector<1x32xbf16>, vector<32x32xbf16>, vector<1x32xf32> -> vector<1x32xf32>
    %c16 = arith.constant 16 : index
    %c0_78 = arith.constant 0 : index
    %264 = vector.load %arg5[%c16, %c0_78] : memref<24x128xf32, #tpu.memory_space<vmem>>, vector<1x32xf32>
    %265 = vector.shape_cast %264 : vector<1x32xf32> to vector<32xf32>
    %266 = vector.shape_cast %265 : vector<32xf32> to vector<1x32xf32>
    %267 = arith.addf %263, %266 : vector<1x32xf32>
    %268 = math.tanh %267 : vector<1x32xf32>
    %269 = arith.truncf %268 : vector<1x32xf32> to vector<1x32xbf16>
    %c352 = arith.constant 352 : index
    %c0_79 = arith.constant 0 : index
    %270 = vector.load %arg4[%c352, %c0_79] : memref<384x128xbf16, #tpu.memory_space<vmem>>, vector<32x4xbf16>
    %cst_80 = arith.constant dense<0.000000e+00> : vector<1x4xf32>
    %271 = tpu.matmul %269, %270, %cst_80 {dimension_numbers = #tpu.dot_dimension_numbers<[1], [0], [0], [1], [0, 0, 1, 1], [], []>} : vector<1x32xbf16>, vector<32x4xbf16>, vector<1x4xf32> -> vector<1x4xf32>
    %c17 = arith.constant 17 : index
    %c0_81 = arith.constant 0 : index
    %272 = vector.load %arg5[%c17, %c0_81] : memref<24x128xf32, #tpu.memory_space<vmem>>, vector<1x4xf32>
    %273 = vector.shape_cast %272 : vector<1x4xf32> to vector<4xf32>
    %274 = vector.shape_cast %273 : vector<4xf32> to vector<1x4xf32>
    %275 = arith.addf %271, %274 : vector<1x4xf32>
    %cst_82 = arith.constant dense<0xFF800000> : vector<1xf32>
    %276 = vector.multi_reduction <maximumf>, %275, %cst_82 [1] : vector<1x4xf32> to vector<1xf32>
    %277 = vector.shape_cast %276 : vector<1xf32> to vector<1x1xf32>
    %278 = vector.broadcast %277 : vector<1x1xf32> to vector<1x4xf32>
    %279 = arith.subf %275, %278 : vector<1x4xf32>
    %280 = math.exp %279 : vector<1x4xf32>
    %cst_83 = arith.constant dense<0.000000e+00> : vector<1xf32>
    %281 = vector.multi_reduction <add>, %280, %cst_83 [1] : vector<1x4xf32> to vector<1xf32>
    %282 = vector.shape_cast %281 : vector<1xf32> to vector<1x1xf32>
    %283 = math.log %282 : vector<1x1xf32>
    %284 = arith.addf %277, %283 : vector<1x1xf32>
    %285 = vector.broadcast %284 : vector<1x1xf32> to vector<1x4xf32>
    %286 = arith.subf %275, %285 : vector<1x4xf32>
    %287 = arith.index_cast %arg0 : i32 to index
    %288 = memref.load %arg1[%287] : memref<2xi32, #tpu.memory_space<smem>>
    %289 = tpu.iota {dimensions = array<i32: 1>} : vector<1x4xi32>
    %290 = vector.broadcast %288 : i32 to vector<1x4xi32>
    %291 = arith.cmpi eq, %289, %290 : vector<1x4xi32>
    %cst_84 = arith.constant 0.000000e+00 : f32
    %292 = vector.broadcast %cst_84 : f32 to vector<1x4xf32>
    %293 = arith.select %291, %286, %292 : vector<1x4xi1>, vector<1x4xf32>
    %cst_85 = arith.constant dense<0.000000e+00> : vector<1xf32>
    %294 = vector.multi_reduction <add>, %293, %cst_85 [1] : vector<1x4xf32> to vector<1xf32>
    %295 = vector.shape_cast %294 : vector<1xf32> to vector<1x1xf32>
    %cst_86 = arith.constant 0.000000e+00 : f32
    %296 = vector.broadcast %cst_86 : f32 to vector<1x1xf32>
    %297 = arith.subf %296, %295 : vector<1x1xf32>
    %298 = tpu.iota {dimensions = array<i32: 1>} : vector<1x128xi32>
    %cst_87 = arith.constant 0.000000e+00 : f32
    %299 = vector.broadcast %cst_87 : f32 to vector<1x124xf32>
    %300 = tpu.concatenate %275, %299 in 1 : vector<1x4xf32>, vector<1x124xf32> -> vector<1x128xf32>
    %c4_i32 = arith.constant 4 : i32
    %301 = vector.broadcast %c4_i32 : i32 to vector<1x128xi32>
    %302 = arith.cmpi eq, %298, %301 : vector<1x128xi32>
    %303 = vector.shape_cast %297 : vector<1x1xf32> to vector<1x1xf32>
    %304 = vector.broadcast %303 : vector<1x1xf32> to vector<1x128xf32>
    %305 = arith.select %302, %304, %300 : vector<1x128xi1>, vector<1x128xf32>
    %306 = vector.shape_cast %305 : vector<1x128xf32> to vector<1x128xf32>
    %307 = vector.broadcast %306 : vector<1x128xf32> to vector<8x128xf32>
    %308 = vector.shape_cast %307 : vector<8x128xf32> to vector<1x8x128xf32>
    %c0_88 = arith.constant 0 : index
    %c0_89 = arith.constant 0 : index
    %c0_90 = arith.constant 0 : index
    %309 = vector.load %arg6[%c0_88, %c0_89, %c0_90] : memref<1x8x128xf32, #tpu.memory_space<vmem>>, vector<1x8x128xf32>
    tpu.vector_store %arg6[%c0_88, %c0_89, %c0_90], %308 {strides = array<i32>} : memref<1x8x128xf32, #tpu.memory_space<vmem>>, vector<1x8x128xf32>,
    return
  }
  func.func @transform_0(%arg0: i32, %arg1: memref<2xi32, #tpu.memory_space<smem>>) -> (i32, i32, i32) {
    %c0_i32 = arith.constant 0 : i32
    %c0_i32_0 = arith.constant 0 : i32
    %c0_i32_1 = arith.constant 0 : i32
    return %arg0, %c0_i32, %c0_i32_0 : i32, i32, i32
  }
  func.func @transform_1(%arg0: i32, %arg1: memref<2xi32, #tpu.memory_space<smem>>) -> (i32, i32, i32) {
    %c0_i32 = arith.constant 0 : i32
    %c0_i32_0 = arith.constant 0 : i32
    %c0_i32_1 = arith.constant 0 : i32
    return %arg0, %c0_i32, %c0_i32_0 : i32, i32, i32
  }
  func.func @transform_2(%arg0: i32, %arg1: memref<2xi32, #tpu.memory_space<smem>>) -> (i32, i32) {
    %c0_i32 = arith.constant 0 : i32
    %c0_i32_0 = arith.constant 0 : i32
    %c0_i32_1 = arith.constant 0 : i32
    return %c0_i32, %c0_i32_0 : i32, i32
  }
  func.func @transform_3(%arg0: i32, %arg1: memref<2xi32, #tpu.memory_space<smem>>) -> (i32, i32) {
    %c0_i32 = arith.constant 0 : i32
    %c0_i32_0 = arith.constant 0 : i32
    %c0_i32_1 = arith.constant 0 : i32
    return %c0_i32, %c0_i32_0 : i32, i32
  }
  func.func @transform_4(%arg0: i32, %arg1: memref<2xi32, #tpu.memory_space<smem>>) -> (i32, i32, i32) {
    %c0_i32 = arith.constant 0 : i32
    %c0_i32_0 = arith.constant 0 : i32
    %c0_i32_1 = arith.constant 0 : i32
    return %arg0, %c0_i32, %c0_i32_0 : i32, i32, i32
  }
}

</mosaic_0001>

<bundles_post_ra>
// kernel: _lambda_.1
= control target key start
LH: loop header
LB: loop body
LE: loop exit
PB: predicated region body
PF: predicated region fallthrough
CT: control target
= control target key end

     0   :  { %s3799_s0 = inlined_call_operand.vmem [shape: s32[2], index: 0, kind: input, shape index: {}]   ;;  %s3800_s1 = inlined_call_operand.vmem [shape: f32[2,8,32], index: 1, kind: input, shape index: {}]   ;;  %s3801_s2 = inlined_call_operand.vmem [shape: f32[2,1,8], index: 2, kind: input, shape index: {}]   ;;  %s3802_s3 = inlined_call_operand.vmem [shape: bf16[384,128], index: 3, kind: input, shape index: {}]   ;;  %s3803_s4 = inlined_call_operand.vmem [shape: f32[24,128], index: 4, kind: input, shape index: {}]   ;;  %s3804_s5 = inlined_call_operand.vmem [shape: f32[2,8,128], index: 5, kind: output, shape index: {}]  }
   0x1   :  { %s10_s20 = sshll.u32 %s3799_s0, 4  ;;  %s11_s20 = int_to_ptr.vmem [resolvable:$true] %s10_s20 }
   0x2   :  { %s3267_s21 = scalar_lea.vmem %s11_s20, 16  ;;  %p3272_p1 = scmp.lt.s32.totalorder %s11_s20, %s11_s20 }
   0x3   :  { %p3268_p0 = scmp.ne.s32.totalorder %s11_s20, %s3267_s21  ;;  %p3273_p2 = scmp.lt.s32.totalorder %s3267_s21, %s3267_s21 }
   0x5   :  { %p3274_p3 = por %p3273_p2, %p3272_p1 }
   0x7   :  { %p3275_p4 = pnand %p3274_p3, %p3268_p0 }
   0x9   :  { %3278 = shalt.err (!%p3275_p4)  }
   0xa   :  { %s3289_s22 = smov [#allocation3]  }
   0xb   :  { %13 = dma.vmem_to_smem %s11_s20, 16, %s3289_s22, [#allocation2] }
   0xc   :  { %3283 = dma.done.wait [#allocation2], 16 }
   0xd   :  { %3284 = vsyncadd [#allocation2], 4294967280 }
   0xe   :  { %15 = sfence }
   0xf   :  { %s3335_s23 = smov 0  }
  0x10 LB: > { %s3341_s0 = sadd.s32 4294967295, %s3287_s23   ;;  %p2845_p5 = scmp.ge.s32.totalorder %s3287_s23, 1  ;;  %s3287_s23 = sphi %s3335_s23, %s21_s23  }
  0x11   : > { %p176_p6 = scmp.lt.s32.totalorder %s3287_s23, 3 }
  0x13   : > { %p177_p7 = pnand %p2845_p5, %p176_p6 }
  0x14   : > { %p203_p8 = scmp.lt.s32.totalorder (!%p177_p7), %s3341_s0, 1  ;;  %s3292_s10 = smov (!%p177_p7), 104  }
  0x15   : > { %180 = sbr.rel (%p177_p7) target bundleno = 6576 (0x19b0), region = 36  ;;  %s3293_s11 = smov (!%p177_p7), 120  }
  0x16   : > { %s3294_s12 = smov (!%p177_p7), 96   ;;  %s3295_s13 = smov (!%p177_p7), 112  }
  0x17   : > { %s3296_s17 = smov (!%p177_p7), 64   ;;  %s3299_s22 = smov (!%p177_p7), 16  }
  0x18   : > { %s3300_s24 = smov (!%p177_p7), 8   ;;  %s3301_s25 = smov (!%p177_p7), 24  }
  0x19   : > { %s2760_s30 = sld [smem:[#allocation3 + %s3341_s0]] (!%p177_p7) }
  0x1a   : > { %v3193_v0 = vld [vmem:[%s3802_s3 + $0x8] sm:$0xff]   ;;  %v3290_v1 = vmov 0.0   ;;  %v3194_v2 = vld [vmem:[%s3802_s3] sm:$0xff]   ;;  %vm3291_vm0 = vmmov 0   ;;  %s3360_s28 = scalar_select %p203_p8, %s3341_s0, 1  ;;  %vm245_vm1 = vcmask 261120  }
  0x1b   : > { %2987 = vmatprep.subr.bf16.mxu0 %v3290_v1  ;;  %2995 = vmatprep.subr.bf16.mxu1 %v3290_v1  ;;  %v2849_v5 = vld [vmem:[%s3803_s4] ss:$0 sm:$0xff]  ;;  %vm377_vm2 = vcmask 1043456   ;;  %vm373_vm3 = vcmask 64512   ;;  %vm1144_vm4 = vcmask 130048   ;;  %vm1146_vm5 = vcmask 195584  }
  0x1c   : > { %2988 = vmatpush3.bf16.msra.mxu0 %v3193_v0  ;;  %2991 = vmatprep.mubr.msk.bf16.mxu0 %vm3291_vm0, %v3290_v1  ;;  %s2846_s29 = sshll.u32 %s3360_s28, 3  ;;  %s209_s16 = scalar_lea.vmem %s3801_s2, %s3360_s28  ;;  %vm1352_vm6 = vcmask 523264   ;;  %vm2746_vm7 = vcmask 24576   ;;  %vm2770_vm9 = vcmask 31744  }
  0x1d   : > { %2989 = vmatprep.subr.bf16.mxu0 %v3290_v1  ;;  %2997 = vmatprep.mubr.msk.bf16.mxu1 %vm3291_vm0, %v3290_v1  ;;  %s206_s7 = scalar_lea.vmem %s3800_s1, %s2846_s29  ;;  %v3429_v27 = vld [vmem:[%s209_s16] ss:$0 sm:$0xff] }
  0x1e   : > { %v3369_v3 = vld [vmem:[%s206_s7] sm:$0xff] }
  0x1f   : > { %v223_v4 = vpack.c.bf16 %v3369_v3, %v3369_v3 }
  0x20   : > { %2990 = vmatpush3.bf16.msra.mxu0 %v3194_v2 }
  0x21   : > { %3007 = vmatprep.subr.bf16.mxu0 %v3290_v1 }
  0x23   : > { %2992 = vmatmul.mubr.msk.bf16.vlgmr.msra.gmra.mxu0 %vm245_vm1, %v223_v4 }
  0x24   : > { %3009 = vmatprep.mubr.msk.bf16.mxu0 %vm3291_vm0, %v3290_v1 }
  0xe3   : > { %v283_v6 = vpop.f32.mrf.mxu0 }
  0xe4   : > { %v284_v7 = vadd.f32 %v2849_v5, %v283_v6 }
  0xe5   : > { %v2993_v8 = vpop.f32.mrf.mxu0 }
  0xe6   : > { %v3379_v9 = vpack.c.bf16 %v284_v7, %v284_v7 }
  0xe7   : > { %v286_v10 = vpop.f32.mrf.mxu0 }
  0xe8   : > { %295 = vrot.lane.b32.xlu1 %v3379_v9, %s3292_s10  ;;  %291 = vrot.lane.b32.xlu0 %v3379_v9, %s3293_s11 }
  0xe9   : > { %v2994_v11 = vpop.f32.mrf.mxu0 }
  0xec   : > { %297 = vrot.lane.b32.xlu1 %v3379_v9, %s3294_s12  ;;  %293 = vrot.lane.b32.xlu0 %v3379_v9, %s3295_s13 }
 0x15a   : > { %v3389_v12 = vpop.permute.xlu0 %291  ;;  %v3393_v13 = vpop.permute.xlu1 %295 }
 0x15b   : > { %299 = vrot.lane.b32.xlu0 %v3389_v12, %s3294_s12 }
 0x15e   : > { %v3395_v14 = vpop.permute.xlu0 %293  ;;  %v298_v15 = vpop.permute.xlu1 %297 }
 0x15f   : > { %303 = vrot.lane.b32.xlu0 %v3393_v13, %s3294_s12  ;;  %301 = vrot.lane.b32.xlu1 %v3395_v14, %s3294_s12 }
 0x182   : > { %309 = vxpose.xlu1.c.b16.start.end [1/1] (short) (narrow) %v298_v15, 16 }
 0x1cd   : > { %v300_v16 = vpop.permute.xlu0 %299 }
 0x1ce   : > { %325 = vxpose.xlu0.c.b16.start.end [1/1] (short) (narrow) %v300_v16, 16 }
 0x1d1   : > { %v302_v17 = vpop.permute.xlu1 %301  ;;  %v304_v18 = vpop.permute.xlu0 %303 }
 0x1d2   : > { %341 = vxpose.xlu0.c.b16.start.end [1/1] (short) (narrow) %v302_v17, 16  ;;  %357 = vxpose.xlu1.c.b16.start.end [1/1] (short) (narrow) %v304_v18, 16 }
 0x1e4   : > { %v317_v19 = vpop.trf.xlu1 }
 0x1e5   : > { %v379_v20 = vsel %vm377_vm2, %v317_v19, 0 }
 0x1e6   : > { %2996 = vmatpush3.bf16.msra.mxu1 %v379_v20 }
 0x1e7   : > { %3001 = vmatprep.subr.bf16.mxu1 %v3290_v1 }
 0x1e9   : > { %2998 = vmatmul.mubr.msk.bf16.vlgmr.msra.gmra.mxu1 %vm373_vm3, %v3379_v9 }
 0x1ea   : > { %3003 = vmatprep.mubr.msk.bf16.mxu1 %vm3291_vm0, %v3290_v1 }
 0x230   : > { %v333_v21 = vpop.trf.xlu0 }
 0x231   : > { %v425_v22 = vsel %vm377_vm2, %v333_v21, 0 }
 0x232   : > { %3002 = vmatpush3.bf16.msra.mxu1 %v425_v22 }
 0x233   : > { %3013 = vmatprep.subr.bf16.mxu1 %v3290_v1 }
 0x234   : > { %v349_v23 = vpop.trf.xlu0  ;;  %v365_v24 = vpop.trf.xlu1 }
 0x235   : > { %v471_v25 = vsel %vm377_vm2, %v349_v23, 0  ;;  %3004 = vmatmul.mubr.msk.bf16.vlgmr.msra.gmra.mxu1 %vm373_vm3, %v3389_v12  ;;  %v517_v26 = vsel %vm377_vm2, %v365_v24, 0 }
 0x236   : > { %3008 = vmatpush3.bf16.msra.mxu0 %v471_v25  ;;  %3014 = vmatpush3.bf16.msra.mxu1 %v517_v26 }
 0x237   : > { %3015 = vmatprep.mubr.msk.bf16.mxu1 %vm3291_vm0, %v3290_v1  ;;  %3019 = vmatprep.subr.bf16.mxu0 %v3290_v1 }
 0x238   : > { %3025 = vmatprep.subr.bf16.mxu1 %v3290_v1 }
 0x239   : > { %3010 = vmatmul.mubr.msk.bf16.vlgmr.msra.gmra.mxu0 %vm373_vm3, %v3395_v14 }
 0x23a   : > { %3021 = vmatprep.mubr.msk.bf16.mxu0 %vm3291_vm0, %v3290_v1 }
 0x23d   : > { %3016 = vmatmul.mubr.msk.bf16.vlgmr.msra.gmra.mxu1 %vm373_vm3, %v3393_v13 }
 0x23e   : > { %3027 = vmatprep.mubr.msk.bf16.mxu1 %vm3291_vm0, %v3290_v1 }
 0x2a9   : > { %v415_v28 = vpop.f32.mrf.mxu1 }
 0x2aa   : > { %v416_v29 = vadd.f32 %v3429_v27, %v415_v28 }
 0x2ab   : > { %v2999_v30 = vpop.f32.mrf.mxu1 }
 0x2ac   : > { %v559_v31 = vsel %vm373_vm3, %v416_v29, -inf }
 0x2ad   : > { %v418_v32 = vpop.f32.mrf.mxu1  ;;  %560 = vmax.xlane.f32.xlu0 %v559_v31 }
 0x2af   : > { %v3000_v33 = vpop.f32.mrf.mxu1 }
 0x2f5   : > { %v461_v34 = vpop.f32.mrf.mxu1 }
 0x2f6   : > { %v462_v35 = vadd.f32 %v3429_v27, %v461_v34 }
 0x2f7   : > { %v3005_v36 = vpop.f32.mrf.mxu1 }
 0x2f8   : > { %v562_v37 = vsel %vm373_vm3, %v462_v35, -inf }
 0x2f9   : > { %563 = vmax.xlane.f32.xlu1 %v562_v37  ;;  %v464_v38 = vpop.f32.mrf.mxu1  ;;  %v507_v39 = vpop.f32.mrf.mxu0 }
 0x2fa   : > { %v508_v40 = vadd.f32 %v3429_v27, %v507_v39 }
 0x2fb   : > { %v3006_v41 = vpop.f32.mrf.mxu1  ;;  %v3011_v42 = vpop.f32.mrf.mxu0 }
 0x2fc   : > { %v565_v43 = vsel %vm373_vm3, %v508_v40, -inf }
 0x2fd   : > { %v553_v44 = vpop.f32.mrf.mxu1  ;;  %566 = vmax.xlane.f32.xlu0 %v565_v43  ;;  %v510_v45 = vpop.f32.mrf.mxu0 }
 0x2fe   : > { %v554_v46 = vadd.f32 %v3429_v27, %v553_v44 }
 0x2ff   : > { %v3012_v47 = vpop.f32.mrf.mxu0  ;;  %v3017_v48 = vpop.f32.mrf.mxu1 }
 0x300   : > { %v568_v49 = vsel %vm373_vm3, %v554_v46, -inf }
 0x301   : > { %569 = vmax.xlane.f32.xlu1 %v568_v49  ;;  %v556_v50 = vpop.f32.mrf.mxu1 }
 0x303   : > { %v3018_v51 = vpop.f32.mrf.mxu1 }
 0x312   : > { %609 = vrot.lane.b32.xlu1 %v3389_v12, %s3296_s17 }
 0x313   : > { %607 = vrot.lane.b32.xlu0 %v3379_v9, %s3296_s17 }
 0x336   : > { %v561_v52 = vpop.xlane.xlu0 %560 }
 0x337   : > { %v571_v53 = vsub.f32 %v416_v29, %v561_v52 }
 0x339   : > { %v575_v54 = vmul.f32 1.442695, %v571_v53 }
 0x33b   : > { %3217 = vpow2.f32 %v575_v54 }
 0x348   : > { %v3218_v55 = vpop.eup %3217 }
 0x349   : > { %v583_v56 = vsel %vm373_vm3, %v3218_v55, 0.0 }
 0x34a   : > { %584 = vadd.xlane.f32.xlu0 %v583_v56  ;;  %v3297_v56 = vmov 1983009808  }
 0x382   : > { %v564_v57 = vpop.xlane.xlu1 %563 }
 0x383   : > { %v572_v58 = vsub.f32 %v462_v35, %v564_v57  ;;  %v998_v57 = vunpack.c.l.s4 %v3297_v56 }
 0x385   : > { %v577_v59 = vmul.f32 1.442695, %v572_v58  ;;  %v1000_v58 = vlaneseq }
 0x386   : > { %v567_v60 = vpop.xlane.xlu0 %566 }
 0x387   : > { %3219 = vpow2.f32 %v577_v59  ;;  %v573_v61 = vsub.f32 %v508_v40, %v567_v60  ;;  %v3298_v59 = vmov 1934713408  }
 0x388   : > { %v1030_v60 = vunpack.c.l.s4 %v3298_v59 }
 0x389   : > { %v579_v62 = vmul.f32 1.442695, %v573_v61  ;;  %v999_v61 = vunpack.c.0.s8 %v998_v57 }
 0x38a   : > { %v570_v63 = vpop.xlane.xlu1 %569  ;;  %v608_v10 = vpop.permute.xlu0 %607 }
 0x38b   : > { %3221 = vpow2.f32 %v579_v62  ;;  %v574_v0 = vsub.f32 %v554_v46, %v570_v63  ;;  %v3472_v62 = vshrl.u32 %v1000_v58, 7 }
 0x38d   : > { %v581_v2 = vmul.f32 1.442695, %v574_v0 }
 0x38e   : > { %v610_v11 = vpop.permute.xlu1 %609 }
 0x38f   : > { %3223 = vpow2.f32 %v581_v2  ;;  %v1031_v2 = vunpack.c.0.s8 %v1030_v60 }
 0x394   : > { %v3220_v4 = vpop.eup %3219 }
 0x395   : > { %v586_v5 = vsel %vm373_vm3, %v3220_v4, 0.0 }
 0x396   : > { %587 = vadd.xlane.f32.xlu1 %v586_v5 }
 0x398   : > { %v3222_v6 = vpop.eup %3221 }
 0x399   : > { %v589_v7 = vsel %vm373_vm3, %v3222_v6, 0.0 }
 0x39a   : > { %590 = vadd.xlane.f32.xlu1 %v589_v7 }
 0x39c   : > { %v3224_v8 = vpop.eup %3223 }
 0x39d   : > { %v592_v9 = vsel %vm373_vm3, %v3224_v8, 0.0 }
 0x39e   : > { %593 = vadd.xlane.f32.xlu0 %v592_v9 }
 0x3ab   : > { %613 = vrot.lane.b32.xlu1 %v3393_v13, %s3296_s17 }
 0x3b4   : > { %611 = vrot.lane.b32.xlu0 %v3395_v14, %s3296_s17 }
 0x3ce   : > { %619 = vxpose.xlu1.c.b16.start.end [1/1] (short) (narrow) %v608_v10, 16  ;;  %v3478_v10 = vsub.s32 %v1031_v2, %v3472_v62 }
 0x3d2   : > { %635 = vxpose.xlu0.c.b16.start.end [1/1] (short) (narrow) %v610_v11, 16 }
 0x3d3   : > { %v585_v12 = vpop.xlane.xlu0 %584 }
 0x3d4   : > { %3225 = vrcp.f32 %v585_v12 }
 0x3e1   : > { %v3226_v15 = vpop.eup %3225 }
 0x3e2   : > { %v599_v16 = vmul.f32 %v3226_v15, %v3218_v55 }
 0x3e4   : > { %v603_v17 = vpack.c.bf16 %v599_v16, %v599_v16 }
 0x3e6   : > { %v687_v18 = vsel %vm373_vm3, %v603_v17, 0  ;;  %v3195_v17 = vld [vmem:[%s3802_s3 + $0x18] sm:$0xff]  }
 0x3e7   : > { %3020 = vmatpush3.bf16.xpose.msra.mxu0 %v687_v18 }
 0x3e8   : > { %3031 = vmatprep.subr.bf16.mxu0 %v3290_v1 }
 0x41f   : > { %v588_v19 = vpop.xlane.xlu1 %587 }
 0x420   : > { %3227 = vrcp.f32 %v588_v19 }
 0x423   : > { %v591_v13 = vpop.xlane.xlu1 %590 }
 0x424   : > { %3229 = vrcp.f32 %v591_v13 }
 0x427   : > { %v614_v20 = vpop.permute.xlu1 %613  ;;  %v594_v14 = vpop.xlane.xlu0 %593 }
 0x428   : > { %3231 = vrcp.f32 %v594_v14  ;;  %667 = vxpose.xlu1.c.b16.start.end [1/1] (short) (narrow) %v614_v20, 16 }
 0x42b   : > { %v612_v21 = vpop.permute.xlu0 %611 }
 0x42c   : > { %651 = vxpose.xlu0.c.b16.start.end [1/1] (short) (narrow) %v612_v21, 16 }
 0x42d   : > { %v3228_v22 = vpop.eup %3227 }
 0x42e   : > { %v600_v23 = vmul.f32 %v3228_v22, %v3220_v4  ;;  %v3475_v4 = vsub.s32 %v999_v61, %v3472_v62 }
 0x430   : > { %v604_v24 = vpack.c.bf16 %v600_v23, %v600_v23  ;;  %v627_v25 = vpop.trf.xlu1 }
 0x431   : > { %v3230_v26 = vpop.eup %3229  ;;  %3022 = vmatmul.mubr.msk.bf16.vlgmr.msra.gmra.mxu0 %vm373_vm3, %v627_v25 }
 0x432   : > { %v733_v28 = vsel %vm373_vm3, %v604_v24, 0  ;;  %v601_v29 = vmul.f32 %v3230_v26, %v3222_v6  ;;  %3033 = vmatprep.mubr.msk.bf16.mxu0 %vm3291_vm0, %v3290_v1  ;;  %v3196_v24 = vld [vmem:[%s3802_s3 + $0x10] sm:$0xff]  }
 0x433   : > { %3026 = vmatpush3.bf16.xpose.msra.mxu1 %v733_v28 }
 0x434   : > { %v605_v30 = vpack.c.bf16 %v601_v29, %v601_v29  ;;  %3037 = vmatprep.subr.bf16.mxu1 %v3290_v1  ;;  %v643_v34 = vpop.trf.xlu0 }
 0x435   : > { %v3232_v31 = vpop.eup %3231 }
 0x436   : > { %v779_v32 = vsel %vm373_vm3, %v605_v30, 0  ;;  %v602_v33 = vmul.f32 %v3232_v31, %v3224_v8 }
 0x437   : > { %3032 = vmatpush3.bf16.xpose.msra.mxu0 %v779_v32 }
 0x438   : > { %v606_v35 = vpack.c.bf16 %v602_v33, %v602_v33  ;;  %3043 = vmatprep.subr.bf16.mxu0 %v3290_v1 }
 0x43a   : > { %3028 = vmatmul.mubr.msk.bf16.vlgmr.msra.gmra.mxu1 %vm373_vm3, %v643_v34  ;;  %v825_v36 = vsel %vm373_vm3, %v606_v35, 0 }
 0x43b   : > { %3038 = vmatpush3.bf16.xpose.msra.mxu1 %v825_v36  ;;  %3039 = vmatprep.mubr.msk.bf16.mxu1 %vm3291_vm0, %v3290_v1 }
 0x43c   : > { %3051 = vmatprep.subr.bf16.mxu1 %v3290_v1 }
 0x48a   : > { %v675_v37 = vpop.trf.xlu1 }
 0x48b   : > { %3040 = vmatmul.mubr.msk.bf16.vlgmr.msra.gmra.mxu1 %vm373_vm3, %v675_v37 }
 0x48c   : > { %3055 = vmatprep.mubr.msk.bf16.mxu1 %vm3291_vm0, %v3290_v1 }
 0x48e   : > { %v659_v38 = vpop.trf.xlu0 }
 0x48f   : > { %3034 = vmatmul.mubr.msk.bf16.vlgmr.msra.gmra.mxu0 %vm373_vm3, %v659_v38 }
 0x490   : > { %3047 = vmatprep.mubr.msk.bf16.mxu0 %vm3291_vm0, %v3290_v1  ;;  %3044 = vmatpush3.bf16.msra.mxu0 %v3195_v17  ;;  %v2868_v17 = vld [vmem:[%s3803_s4 + $0x3] ss:$0 sm:$0xff] }
 0x491   : > { %3045 = vmatprep.subr.bf16.mxu0 %v3290_v1 }
 0x494   : > { %3046 = vmatpush3.bf16.msra.mxu0 %v3196_v24 }
 0x495   : > { %3059 = vmatprep.subr.bf16.mxu0 %v3290_v1 }
 0x4f1   : > { %v723_v39 = vpop.f32.mrf.mxu0 }
 0x4f2   : > { %867 = vxpose.xlu0.b32.start.end [1/1] (short) (narrow) %v723_v39, 8 }
 0x4f3   : > { %v3023_v40 = vpop.f32.mrf.mxu0 }
 0x4f5   : > { %v726_v41 = vpop.f32.mrf.mxu0 }
 0x4f7   : > { %v3024_v42 = vpop.f32.mrf.mxu0 }
 0x4fa   : > { %v769_v43 = vpop.f32.mrf.mxu1 }
 0x4fb   : > { %899 = vxpose.xlu1.b32.start.end [1/1] (short) (narrow) %v769_v43, 8 }
 0x4fc   : > { %v3029_v44 = vpop.f32.mrf.mxu1 }
 0x4fe   : > { %v772_v45 = vpop.f32.mrf.mxu1 }
 0x500   : > { %v3030_v46 = vpop.f32.mrf.mxu1 }
 0x54b   : > { %v861_v47 = vpop.f32.mrf.mxu1 }
 0x54d   : > { %v3041_v48 = vpop.f32.mrf.mxu1 }
 0x54f   : > { %v815_v49 = vpop.f32.mrf.mxu0  ;;  %v864_v50 = vpop.f32.mrf.mxu1 }
 0x550   : > { %931 = vxpose.xlu0.b32.start.end [1/1] (short) (narrow) %v815_v49, 8 }
 0x551   : > { %v3035_v51 = vpop.f32.mrf.mxu0  ;;  %v3042_v52 = vpop.f32.mrf.mxu1 }
 0x553   : > { %v818_v53 = vpop.f32.mrf.mxu0 }
 0x554   : > { %963 = vxpose.xlu0.b32.start.end [1/1] (short) (narrow) %v861_v47, 8  ;;  %v2863_v53 = vld [vmem:[%s3803_s4 + $0x1] ss:$0 sm:$0xff] }
 0x555   : > { %v3036_v54 = vpop.f32.mrf.mxu0 }
 0x56e   : > { %v883_v55 = vpop.trf.xlu0 }
 0x577   : > { %v915_v0 = vpop.trf.xlu1 }
 0x5cc   : > { %v947_v63 = vpop.trf.xlu0 }
 0x5cd   : > { %v995_v5 = vcombine.low %v883_v55, %v947_v63  ;;  %v996_v6 = vcombine.high %v883_v55, %v947_v63 }
 0x5cf   : > { %v1003_v11 = vrot.slane %v995_v5, %v3475_v4  ;;  %v1010_v12 = vrot.slane %v996_v6, %v3475_v4 }
 0x5d0   : > { %v979_v7 = vpop.trf.xlu0 }
 0x5d1   : > { %v1011_v8 = vcombine.low %v915_v0, %v979_v7  ;;  %v1012_v9 = vcombine.high %v915_v0, %v979_v7  ;;  %v3197_v7 = vld [vmem:[%s3802_s3 + $0x28] sm:$0xff]  }
 0x5d2   : > { %3052 = vmatpush3.bf16.msra.mxu1 %v3197_v7 }
 0x5d3   : > { %v1019_v15 = vrot.slane %v1011_v8, %v3475_v4  ;;  %v1026_v16 = vrot.slane %v1012_v9, %v3475_v4  ;;  %3053 = vmatprep.subr.bf16.mxu1 %v3290_v1 }
 0x5d5   : > { %v1027_v18 = vcombine.low %v1003_v11, %v1019_v15  ;;  %v1028_v19 = vcombine.high %v1003_v11, %v1019_v15  ;;  %v1043_v13 = vcombine.low %v1010_v12, %v1026_v16  ;;  %v1044_v20 = vcombine.high %v1010_v12, %v1026_v16  ;;  %v2867_v12 = vld [vmem:[%s3803_s4 + $0x2] ss:$0 sm:$0xff] }
 0x5d7   : > { %v1035_v14 = vrot.slane %v1027_v18, %v3478_v10  ;;  %v1042_v21 = vrot.slane %v1028_v19, %v3478_v10  ;;  %v1051_v22 = vrot.slane %v1043_v13, %v3478_v10  ;;  %v1058_v23 = vrot.slane %v1044_v20, %v3478_v10  ;;  %v3199_v20 = vld [vmem:[%s3802_s3 + $0x48] sm:$0xff]  }
 0x5d9   : > { %v1063_v25 = vcombine.low %v1035_v14, %v1042_v21  ;;  %v2861_v26 = vcombine.high %v1035_v14, %v1042_v21  ;;  %v1079_v28 = vcombine.low %v1051_v22, %v1058_v23  ;;  %v2862_v29 = vcombine.high %v1051_v22, %v1058_v23  ;;  %v3200_v14 = vld [vmem:[%s3802_s3 + $0x40] sm:$0xff]   ;;  %v3201_v21 = vld [vmem:[%s3802_s3 + $0x38] sm:$0xff]   ;;  %v3202_v22 = vld [vmem:[%s3802_s3 + $0x30] sm:$0xff]  }
 0x5da   : > { %v2869_v23 = vld [vmem:[%s3803_s4 + $0x4] ss:$0 sm:$0xff] }
 0x5db   : > { %v1070_v30 = vrot.slane %v1063_v25, %v3475_v4  ;;  %v1078_v31 = vrot.slane %v2861_v26, %v3475_v4  ;;  %v1086_v32 = vrot.slane %v1079_v28, %v3475_v4  ;;  %v1094_v33 = vrot.slane %v2862_v29, %v3475_v4 }
 0x5dd   : > { %v1096_v34 = vcombine.high %v1070_v30, %v1078_v31  ;;  %v1112_v35 = vcombine.high %v1086_v32, %v1094_v33  ;;  %v1095_v36 = vcombine.low %v1070_v30, %v1078_v31  ;;  %v1111_v37 = vcombine.low %v1086_v32, %v1094_v33 }
 0x5df   : > { %v1110_v38 = vrot.slane %v1096_v34, %v3478_v10  ;;  %v1126_v39 = vrot.slane %v1112_v35, %v3478_v10  ;;  %v1103_v40 = vrot.slane %v1095_v36, %v3478_v10  ;;  %v1119_v41 = vrot.slane %v1111_v37, %v3478_v10 }
 0x5e1   : > { %v1129_v42 = vcombine.low %v1110_v38, %v1126_v39  ;;  %v1128_v43 = vcombine.high %v1103_v40, %v1119_v41  ;;  %v1127_v44 = vcombine.low %v1103_v40, %v1119_v41  ;;  %v1130_v45 = vcombine.high %v1110_v38, %v1126_v39  ;;  %v2873_v40 = vld [vmem:[%s3803_s4 + $0x5] ss:$0 sm:$0xff] }
 0x5e3   : > { %1136 = vrot.lane.b32.xlu0 %v1129_v42, %s3299_s22  ;;  %1132 = vrot.lane.b32.xlu1 %v1128_v43, %s3300_s24 }
 0x5e7   : > { %1140 = vrot.lane.b32.xlu1 %v1130_v45, %s3301_s25 }
 0x655   : > { %v1133_v46 = vpop.permute.xlu1 %1132  ;;  %v1137_v47 = vpop.permute.xlu0 %1136 }
 0x656   : > { %v1143_v48 = vsel %vm373_vm3, %v1127_v44, %v1133_v46 }
 0x657   : > { %v1145_v50 = vsel %vm1144_vm4, %v1143_v48, %v1137_v47 }
 0x659   : > { %v1141_v49 = vpop.permute.xlu1 %1140 }
 0x65a   : > { %v1147_v51 = vsel %vm1146_vm5, %v1145_v50, %v1141_v49 }
 0x65b   : > { %v1148_v52 = vpack.c.bf16 %v1147_v51, %v1147_v51 }
 0x65d   : > { %3048 = vmatmul.mubr.msk.bf16.vlgmr.msra.gmra.mxu0 %vm245_vm1, %v1148_v52 }
 0x65e   : > { %3067 = vmatprep.mubr.msk.bf16.mxu0 %vm3291_vm0, %v3290_v1  ;;  %3060 = vmatpush3.bf16.msra.mxu0 %v3199_v20 }
 0x65f   : > { %3061 = vmatprep.subr.bf16.mxu0 %v3290_v1 }
 0x662   : > { %3062 = vmatpush3.bf16.msra.mxu0 %v3200_v14 }
 0x663   : > { %3063 = vmatprep.subr.bf16.mxu0 %v3290_v1 }
 0x666   : > { %3064 = vmatpush3.bf16.msra.mxu0 %v3201_v21 }
 0x667   : > { %3065 = vmatprep.subr.bf16.mxu0 %v3290_v1 }
 0x66a   : > { %3066 = vmatpush3.bf16.msra.mxu0 %v3202_v22 }
 0x66b   : > { %3085 = vmatprep.subr.bf16.mxu0 %v3290_v1 }
 0x71d   : > { %v1207_v54 = vpop.f32.mrf.mxu0 }
 0x71e   : > { %v1208_v55 = vadd.f32 %v2863_v53, %v1207_v54  ;;  %v3203_v53 = vld [vmem:[%s3802_s3 + $0x58] sm:$0xff]   ;;  %v3204_v54 = vld [vmem:[%s3802_s3 + $0x50] sm:$0xff]  }
 0x71f   : > { %v3049_v56 = vpop.f32.mrf.mxu0 }
 0x720   : > { %v1213_v57 = vadd.f32 %v1208_v55, %v3369_v3  ;;  %v3198_v3 = vld [vmem:[%s3802_s3 + $0x20] sm:$0xff]  }
 0x721   : > { %v1210_v59 = vpop.f32.mrf.mxu0  ;;  %3054 = vmatpush3.bf16.msra.mxu1 %v3198_v3 }
 0x722   : > { %v1216_v60 = vsel %vm245_vm1, %v1213_v57, 0.0  ;;  %3071 = vmatprep.subr.bf16.mxu1 %v3290_v1  ;;  %v2879_v59 = vld [vmem:[%s3803_s4 + $0x6] ss:$0 sm:$0xff] }
 0x723   : > { %1217 = vadd.xlane.f32.xlu1 %v1216_v60  ;;  %v3050_v61 = vpop.f32.mrf.mxu0 }
 0x7ac   : > { %v1218_v63 = vpop.xlane.xlu1 %1217 }
 0x7ad   : > { %v1220_v0 = vmul.f32 0.03125, %v1218_v63  ;;  %v2880_v63 = vld [vmem:[%s3803_s4 + $0x7] ss:$0 sm:$0xff] }
 0x7af   : > { %v1221_v2 = vsub.f32 %v1213_v57, %v1220_v0 }
 0x7b1   : > { %v1222_v5 = vmul.f32 %v1221_v2, %v1221_v2  ;;  %v1231_v15 = vmul.f32 %v2867_v12, %v1221_v2 }
 0x7b3   : > { %v1223_v6 = vsel %vm245_vm1, %v1222_v5, 0.0 }
 0x7b4   : > { %1224 = vadd.xlane.f32.xlu0 %v1223_v6  ;;  %v2881_v6 = vld [vmem:[%s3803_s4 + $0x8] ss:$0 sm:$0xff] }
 0x83d   : > { %v1225_v8 = vpop.xlane.xlu0 %1224 }
 0x83e   : > { %v1226_v9 = vmul.f32 0.03125, %v1225_v8 }
 0x840   : > { %v1232_v11 = vadd.f32 1e-06, %v1226_v9 }
 0x842   : > { %3233 = vrsqrt.f32 %v1232_v11 }
 0x84f   : > { %v3234_v16 = vpop.eup %3233 }
 0x850   : > { %v1234_v18 = vmul.f32 %v3234_v16, %v1231_v15 }
 0x852   : > { %v1239_v19 = vadd.f32 %v2868_v17, %v1234_v18 }
 0x854   : > { %v1240_v13 = vpack.c.bf16 %v1239_v19, %v1239_v19 }
 0x856   : > { %3056 = vmatmul.mubr.msk.bf16.vlgmr.msra.gmra.mxu1 %vm245_vm1, %v1240_v13 }
 0x857   : > { %3075 = vmatprep.mubr.msk.bf16.mxu1 %vm3291_vm0, %v3290_v1  ;;  %3072 = vmatpush3.bf16.msra.mxu1 %v3203_v53 }
 0x858   : > { %3073 = vmatprep.subr.bf16.mxu1 %v3290_v1 }
 0x85b   : > { %3074 = vmatpush3.bf16.msra.mxu1 %v3204_v54 }
 0x85c   : > { %3079 = vmatprep.subr.bf16.mxu1 %v3290_v1 }
 0x916   : > { %v1299_v24 = vpop.f32.mrf.mxu1 }
 0x917   : > { %v1300_v25 = vadd.f32 %v2869_v23, %v1299_v24 }
 0x918   : > { %v3057_v26 = vpop.f32.mrf.mxu1 }
 0x919   : > { %v1306_v28 = vmul.f32 %v1300_v25, %v1300_v25  ;;  %v1305_v36 = vmul.f32 0.5, %v1300_v25 }
 0x91a   : > { %v1302_v29 = vpop.f32.mrf.mxu1 }
 0x91b   : > { %v1307_v30 = vmul.f32 %v1306_v28, %v1300_v25 }
 0x91c   : > { %v3058_v31 = vpop.f32.mrf.mxu1 }
 0x91d   : > { %v1308_v32 = vmul.f32 0.044715, %v1307_v30 }
 0x91f   : > { %v1309_v33 = vadd.f32 %v1308_v32, %v1300_v25 }
 0x921   : > { %v1310_v34 = vmul.f32 0.7978846, %v1309_v33 }
 0x923   : > { %3235 = vtanh.f32 %v1310_v34 }
 0x930   : > { %v3236_v35 = vpop.eup %3235 }
 0x931   : > { %v1312_v37 = vadd.f32 1.0, %v3236_v35 }
 0x933   : > { %v1313_v38 = vmul.f32 %v1312_v37, %v1305_v36 }
 0x935   : > { %v1314_v39 = vpack.c.bf16 %v1313_v38, %v1313_v38 }
 0x937   : > { %3068 = vmatmul.mubr.msk.bf16.vlgmr.msra.gmra.mxu0 %vm1352_vm6, %v1314_v39 }
 0x938   : > { %3087 = vmatprep.mubr.msk.bf16.mxu0 %vm3291_vm0, %v3290_v1 }
 0x9f7   : > { %v1390_v41 = vpop.f32.mrf.mxu0 }
 0x9f8   : > { %v1391_v42 = vadd.f32 %v2873_v40, %v1390_v41 }
 0x9f9   : > { %v3069_v43 = vpop.f32.mrf.mxu0 }
 0x9fa   : > { %v1396_v44 = vadd.f32 %v1391_v42, %v1239_v19 }
 0x9fb   : > { %v1393_v45 = vpop.f32.mrf.mxu0 }
 0x9fc   : > { %v1399_v46 = vsel %vm245_vm1, %v1396_v44, 0.0 }
 0x9fd   : > { %1400 = vadd.xlane.f32.xlu1 %v1399_v46  ;;  %v3070_v47 = vpop.f32.mrf.mxu0 }
 0xa86   : > { %v1401_v48 = vpop.xlane.xlu1 %1400 }
 0xa87   : > { %v1402_v49 = vmul.f32 0.03125, %v1401_v48 }
 0xa89   : > { %v1403_v50 = vsub.f32 %v1396_v44, %v1402_v49 }
 0xa8b   : > { %v1404_v51 = vmul.f32 %v1403_v50, %v1403_v50  ;;  %v1413_v60 = vmul.f32 %v2879_v59, %v1403_v50 }
 0xa8d   : > { %v1405_v52 = vsel %vm245_vm1, %v1404_v51, 0.0 }
 0xa8e   : > { %1406 = vadd.xlane.f32.xlu0 %v1405_v52 }
 0xb17   : > { %v1407_v55 = vpop.xlane.xlu0 %1406 }
 0xb18   : > { %v1408_v56 = vmul.f32 0.03125, %v1407_v55 }
 0xb1a   : > { %v1414_v57 = vadd.f32 1e-06, %v1408_v56 }
 0xb1c   : > { %3237 = vrsqrt.f32 %v1414_v57 }
 0xb29   : > { %v3238_v61 = vpop.eup %3237 }
 0xb2a   : > { %v1416_v0 = vmul.f32 %v3238_v61, %v1413_v60 }
 0xb2c   : > { %v3577_v2 = vadd.f32 %v2880_v63, %v1416_v0 }
 0xb2e   : > { %v1422_v5 = vpack.c.bf16 %v3577_v2, %v3577_v2 }
 0xb30   : > { %3076 = vmatmul.mubr.msk.bf16.vlgmr.msra.gmra.mxu1 %vm245_vm1, %v1422_v5 }
 0xb31   : > { %3081 = vmatprep.mubr.msk.bf16.mxu1 %vm3291_vm0, %v3290_v1 }
 0xbf0   : > { %v1481_v7 = vpop.f32.mrf.mxu1 }
 0xbf1   : > { %v1482_v3 = vadd.f32 %v2881_v6, %v1481_v7 }
 0xbf2   : > { %v3077_v8 = vpop.f32.mrf.mxu1 }
 0xbf3   : > { %v3587_v9 = vpack.c.bf16 %v1482_v3, %v1482_v3 }
 0xbf4   : > { %v1484_v11 = vpop.f32.mrf.mxu1 }
 0xbf5   : > { %1491 = vrot.lane.b32.xlu0 %v3587_v9, %s3295_s13  ;;  %1489 = vrot.lane.b32.xlu1 %v3587_v9, %s3293_s11 }
 0xbf6   : > { %v3078_v12 = vpop.f32.mrf.mxu1 }
 0xbf9   : > { %1493 = vrot.lane.b32.xlu1 %v3587_v9, %s3292_s10  ;;  %s213_s10 = scalar_lea.vmem %s3804_s5, %s2846_s29 }
 0xbfd   : > { %1495 = vrot.lane.b32.xlu1 %v3587_v9, %s3294_s12 }
 0xc67   : > { %v3597_v15 = vpop.permute.xlu0 %1491  ;;  %v3599_v16 = vpop.permute.xlu1 %1489 }
 0xc68   : > { %1499 = vrot.lane.b32.xlu1 %v3597_v15, %s3294_s12  ;;  %1497 = vrot.lane.b32.xlu0 %v3599_v16, %s3294_s12 }
 0xc6b   : > { %v3605_v17 = vpop.permute.xlu1 %1493 }
 0xc6c   : > { %1501 = vrot.lane.b32.xlu0 %v3605_v17, %s3294_s12 }
 0xc6f   : > { %v1496_v18 = vpop.permute.xlu1 %1495 }
 0xc8b   : > { %1507 = vxpose.xlu1.c.b16.start.end [1/1] (short) (narrow) %v1496_v18, 16 }
 0xcda   : > { %v1498_v19 = vpop.permute.xlu0 %1497  ;;  %v1500_v13 = vpop.permute.xlu1 %1499 }
 0xcdb   : > { %1523 = vxpose.xlu0.c.b16.start.end [1/1] (short) (narrow) %v1498_v19, 16 }
 0xcde   : > { %v1502_v20 = vpop.permute.xlu0 %1501 }
 0xcdf   : > { %1555 = vxpose.xlu1.c.b16.start.end [1/1] (short) (narrow) %v1502_v20, 16  ;;  %1539 = vxpose.xlu0.c.b16.start.end [1/1] (short) (narrow) %v1500_v13, 16 }
 0xced   : > { %v1515_v14 = vpop.trf.xlu1 }
 0xcee   : > { %v1575_v21 = vsel %vm377_vm2, %v1515_v14, 0 }
 0xcef   : > { %3080 = vmatpush3.bf16.msra.mxu1 %v1575_v21 }
 0xcf0   : > { %3091 = vmatprep.subr.bf16.mxu1 %v3290_v1 }
 0xcf2   : > { %3082 = vmatmul.mubr.msk.bf16.vlgmr.msra.gmra.mxu1 %vm373_vm3, %v3587_v9 }
 0xcf3   : > { %3093 = vmatprep.mubr.msk.bf16.mxu1 %vm3291_vm0, %v3290_v1 }
 0xd3d   : > { %v1531_v22 = vpop.trf.xlu0 }
 0xd3e   : > { %v1621_v23 = vsel %vm377_vm2, %v1531_v22, 0 }
 0xd3f   : > { %3086 = vmatpush3.bf16.msra.mxu0 %v1621_v23 }
 0xd40   : > { %3097 = vmatprep.subr.bf16.mxu0 %v3290_v1 }
 0xd41   : > { %v1547_v24 = vpop.trf.xlu0  ;;  %v1563_v25 = vpop.trf.xlu1 }
 0xd42   : > { %v1667_v26 = vsel %vm377_vm2, %v1547_v24, 0  ;;  %3088 = vmatmul.mubr.msk.bf16.vlgmr.msra.gmra.mxu0 %vm373_vm3, %v3599_v16  ;;  %v1713_v28 = vsel %vm377_vm2, %v1563_v25, 0 }
 0xd43   : > { %3092 = vmatpush3.bf16.msra.mxu1 %v1667_v26  ;;  %3098 = vmatpush3.bf16.msra.mxu0 %v1713_v28 }
 0xd44   : > { %3099 = vmatprep.mubr.msk.bf16.mxu0 %vm3291_vm0, %v3290_v1  ;;  %3103 = vmatprep.subr.bf16.mxu1 %v3290_v1 }
 0xd45   : > { %3109 = vmatprep.subr.bf16.mxu0 %v3290_v1 }
 0xd46   : > { %3094 = vmatmul.mubr.msk.bf16.vlgmr.msra.gmra.mxu1 %vm373_vm3, %v3597_v15 }
 0xd47   : > { %3105 = vmatprep.mubr.msk.bf16.mxu1 %vm3291_vm0, %v3290_v1 }
 0xd4a   : > { %3100 = vmatmul.mubr.msk.bf16.vlgmr.msra.gmra.mxu0 %vm373_vm3, %v3605_v17 }
 0xd4b   : > { %3111 = vmatprep.mubr.msk.bf16.mxu0 %vm3291_vm0, %v3290_v1 }
 0xdb2   : > { %v1611_v29 = vpop.f32.mrf.mxu1 }
 0xdb3   : > { %v1612_v30 = vadd.f32 %v3429_v27, %v1611_v29 }
 0xdb4   : > { %v3083_v31 = vpop.f32.mrf.mxu1 }
 0xdb5   : > { %v1755_v32 = vsel %vm373_vm3, %v1612_v30, -inf }
 0xdb6   : > { %1756 = vmax.xlane.f32.xlu0 %v1755_v32  ;;  %v1614_v33 = vpop.f32.mrf.mxu1 }
 0xdb8   : > { %v3084_v34 = vpop.f32.mrf.mxu1 }
 0xe02   : > { %v1657_v35 = vpop.f32.mrf.mxu0 }
 0xe03   : > { %v1658_v36 = vadd.f32 %v3429_v27, %v1657_v35 }
 0xe04   : > { %v3089_v37 = vpop.f32.mrf.mxu0 }
 0xe05   : > { %v1758_v38 = vsel %vm373_vm3, %v1658_v36, -inf }
 0xe06   : > { %v1703_v39 = vpop.f32.mrf.mxu1  ;;  %1759 = vmax.xlane.f32.xlu1 %v1758_v38  ;;  %v1660_v40 = vpop.f32.mrf.mxu0 }
 0xe07   : > { %v1704_v41 = vadd.f32 %v3429_v27, %v1703_v39 }
 0xe08   : > { %v3090_v42 = vpop.f32.mrf.mxu0  ;;  %v3095_v43 = vpop.f32.mrf.mxu1 }
 0xe09   : > { %v1761_v44 = vsel %vm373_vm3, %v1704_v41, -inf }
 0xe0a   : > { %1762 = vmax.xlane.f32.xlu0 %v1761_v44  ;;  %v1706_v45 = vpop.f32.mrf.mxu1  ;;  %v1749_v46 = vpop.f32.mrf.mxu0 }
 0xe0b   : > { %v1750_v47 = vadd.f32 %v3429_v27, %v1749_v46 }
 0xe0c   : > { %v3096_v48 = vpop.f32.mrf.mxu1  ;;  %v3101_v49 = vpop.f32.mrf.mxu0 }
 0xe0d   : > { %v1764_v50 = vsel %vm373_vm3, %v1750_v47, -inf }
 0xe0e   : > { %1765 = vmax.xlane.f32.xlu1 %v1764_v50  ;;  %v1752_v51 = vpop.f32.mrf.mxu0 }
 0xe10   : > { %v3102_v52 = vpop.f32.mrf.mxu0 }
 0xe1f   : > { %1805 = vrot.lane.b32.xlu1 %v3599_v16, %s3296_s17 }
 0xe20   : > { %1803 = vrot.lane.b32.xlu0 %v3587_v9, %s3296_s17 }
 0xe3f   : > { %v1757_v53 = vpop.xlane.xlu0 %1756 }
 0xe40   : > { %v1767_v54 = vsub.f32 %v1612_v30, %v1757_v53 }
 0xe42   : > { %v1771_v55 = vmul.f32 1.442695, %v1767_v54 }
 0xe44   : > { %3239 = vpow2.f32 %v1771_v55 }
 0xe51   : > { %v3240_v56 = vpop.eup %3239 }
 0xe52   : > { %v1779_v27 = vsel %vm373_vm3, %v3240_v56, 0.0 }
 0xe53   : > { %1780 = vadd.xlane.f32.xlu0 %v1779_v27 }
 0xe8f   : > { %v1760_v57 = vpop.xlane.xlu1 %1759 }
 0xe90   : > { %v1768_v59 = vsub.f32 %v1658_v36, %v1760_v57 }
 0xe92   : > { %v1773_v60 = vmul.f32 1.442695, %v1768_v59 }
 0xe93   : > { %v1763_v61 = vpop.xlane.xlu0 %1762 }
 0xe94   : > { %3241 = vpow2.f32 %v1773_v60  ;;  %v1769_v63 = vsub.f32 %v1704_v41, %v1763_v61 }
 0xe96   : > { %v1775_v0 = vmul.f32 1.442695, %v1769_v63 }
 0xe97   : > { %v1766_v5 = vpop.xlane.xlu1 %1765  ;;  %v1804_v18 = vpop.permute.xlu0 %1803 }
 0xe98   : > { %3243 = vpow2.f32 %v1775_v0  ;;  %v1770_v6 = vsub.f32 %v1750_v47, %v1766_v5 }
 0xe9a   : > { %v1777_v7 = vmul.f32 1.442695, %v1770_v6 }
 0xe9b   : > { %v1806_v13 = vpop.permute.xlu1 %1805 }
 0xe9c   : > { %3245 = vpow2.f32 %v1777_v7 }
 0xea1   : > { %v3242_v3 = vpop.eup %3241 }
 0xea2   : > { %v1782_v8 = vsel %vm373_vm3, %v3242_v3, 0.0 }
 0xea3   : > { %1783 = vadd.xlane.f32.xlu1 %v1782_v8 }
 0xea5   : > { %v3244_v9 = vpop.eup %3243 }
 0xea6   : > { %v1785_v11 = vsel %vm373_vm3, %v3244_v9, 0.0 }
 0xea7   : > { %1786 = vadd.xlane.f32.xlu1 %v1785_v11 }
 0xea9   : > { %v3246_v12 = vpop.eup %3245 }
 0xeaa   : > { %v1788_v16 = vsel %vm373_vm3, %v3246_v12, 0.0 }
 0xeab   : > { %1789 = vadd.xlane.f32.xlu0 %v1788_v16 }
 0xeb8   : > { %1809 = vrot.lane.b32.xlu1 %v3605_v17, %s3296_s17 }
 0xec1   : > { %1807 = vrot.lane.b32.xlu0 %v3597_v15, %s3296_s17 }
 0xedb   : > { %1815 = vxpose.xlu1.c.b16.start.end [1/1] (short) (narrow) %v1804_v18, 16 }
 0xedc   : > { %v1781_v19 = vpop.xlane.xlu0 %1780 }
 0xedd   : > { %3247 = vrcp.f32 %v1781_v19 }
 0xedf   : > { %1831 = vxpose.xlu0.c.b16.start.end [1/1] (short) (narrow) %v1806_v13, 16 }
 0xeea   : > { %v3248_v20 = vpop.eup %3247 }
 0xeeb   : > { %v1795_v14 = vmul.f32 %v3248_v20, %v3240_v56 }
 0xeed   : > { %v1799_v21 = vpack.c.bf16 %v1795_v14, %v1795_v14 }
 0xeef   : > { %v1883_v22 = vsel %vm373_vm3, %v1799_v21, 0 }
 0xef0   : > { %3104 = vmatpush3.bf16.xpose.msra.mxu1 %v1883_v22 }
 0xef1   : > { %3115 = vmatprep.subr.bf16.mxu1 %v3290_v1 }
 0xf2c   : > { %v1784_v23 = vpop.xlane.xlu1 %1783 }
 0xf2d   : > { %3249 = vrcp.f32 %v1784_v23  ;;  %v3206_v23 = vld [vmem:[%s3802_s3 + $0x60] sm:$0xff]  }
 0xf30   : > { %v1787_v17 = vpop.xlane.xlu1 %1786 }
 0xf31   : > { %3251 = vrcp.f32 %v1787_v17 }
 0xf34   : > { %v1790_v24 = vpop.xlane.xlu0 %1789  ;;  %v1810_v15 = vpop.permute.xlu1 %1809 }
 0xf35   : > { %3253 = vrcp.f32 %v1790_v24  ;;  %1863 = vxpose.xlu1.c.b16.start.end [1/1] (short) (narrow) %v1810_v15, 16 }
 0xf38   : > { %v1808_v25 = vpop.permute.xlu0 %1807 }
 0xf39   : > { %1847 = vxpose.xlu0.c.b16.start.end [1/1] (short) (narrow) %v1808_v25, 16 }
 0xf3a   : > { %v3250_v26 = vpop.eup %3249 }
 0xf3b   : > { %v1796_v28 = vmul.f32 %v3250_v26, %v3242_v3 }
 0xf3d   : > { %v1800_v29 = vpack.c.bf16 %v1796_v28, %v1796_v28  ;;  %v1823_v30 = vpop.trf.xlu1 }
 0xf3e   : > { %v3252_v31 = vpop.eup %3251  ;;  %3106 = vmatmul.mubr.msk.bf16.vlgmr.msra.gmra.mxu1 %vm373_vm3, %v1823_v30 }
 0xf3f   : > { %v1929_v32 = vsel %vm373_vm3, %v1800_v29, 0  ;;  %v1797_v33 = vmul.f32 %v3252_v31, %v3244_v9  ;;  %3117 = vmatprep.mubr.msk.bf16.mxu1 %vm3291_vm0, %v3290_v1 }
 0xf40   : > { %3110 = vmatpush3.bf16.xpose.msra.mxu0 %v1929_v32 }
 0xf41   : > { %v1801_v34 = vpack.c.bf16 %v1797_v33, %v1797_v33  ;;  %3121 = vmatprep.subr.bf16.mxu0 %v3290_v1  ;;  %v1839_v38 = vpop.trf.xlu0 }
 0xf42   : > { %v3254_v35 = vpop.eup %3253 }
 0xf43   : > { %v1975_v36 = vsel %vm373_vm3, %v1801_v34, 0  ;;  %v1798_v37 = vmul.f32 %v3254_v35, %v3246_v12  ;;  %v3205_v12 = vld [vmem:[%s3802_s3 + $0x68] sm:$0xff]  }
 0xf44   : > { %3116 = vmatpush3.bf16.xpose.msra.mxu1 %v1975_v36 }
 0xf45   : > { %v1802_v39 = vpack.c.bf16 %v1798_v37, %v1798_v37  ;;  %3127 = vmatprep.subr.bf16.mxu1 %v3290_v1 }
 0xf47   : > { %3112 = vmatmul.mubr.msk.bf16.vlgmr.msra.gmra.mxu0 %vm373_vm3, %v1839_v38  ;;  %v2021_v40 = vsel %vm373_vm3, %v1802_v39, 0 }
 0xf48   : > { %3122 = vmatpush3.bf16.xpose.msra.mxu0 %v2021_v40  ;;  %3123 = vmatprep.mubr.msk.bf16.mxu0 %vm3291_vm0, %v3290_v1 }
 0xf49   : > { %3135 = vmatprep.subr.bf16.mxu0 %v3290_v1 }
 0xf97   : > { %v1871_v41 = vpop.trf.xlu1 }
 0xf98   : > { %3124 = vmatmul.mubr.msk.bf16.vlgmr.msra.gmra.mxu0 %vm373_vm3, %v1871_v41 }
 0xf99   : > { %3139 = vmatprep.mubr.msk.bf16.mxu0 %vm3291_vm0, %v3290_v1 }
 0xf9b   : > { %v1855_v42 = vpop.trf.xlu0 }
 0xf9c   : > { %3118 = vmatmul.mubr.msk.bf16.vlgmr.msra.gmra.mxu1 %vm373_vm3, %v1855_v42 }
 0xf9d   : > { %3131 = vmatprep.mubr.msk.bf16.mxu1 %vm3291_vm0, %v3290_v1  ;;  %3128 = vmatpush3.bf16.msra.mxu1 %v3205_v12 }
 0xf9e   : > { %3129 = vmatprep.subr.bf16.mxu1 %v3290_v1 }
 0xfa1   : > { %3130 = vmatpush3.bf16.msra.mxu1 %v3206_v23 }
 0xfa2   : > { %3143 = vmatprep.subr.bf16.mxu1 %v3290_v1 }
 0xffe   : > { %v1919_v43 = vpop.f32.mrf.mxu1 }
 0xfff   : > { %2063 = vxpose.xlu0.b32.start.end [1/1] (short) (narrow) %v1919_v43, 8 }
0x1000   : > { %v3107_v44 = vpop.f32.mrf.mxu1 }
0x1002   : > { %v1922_v45 = vpop.f32.mrf.mxu1 }
0x1004   : > { %v3108_v46 = vpop.f32.mrf.mxu1 }
0x1007   : > { %v1965_v47 = vpop.f32.mrf.mxu0 }
0x1008   : > { %2095 = vxpose.xlu1.b32.start.end [1/1] (short) (narrow) %v1965_v47, 8 }
0x1009   : > { %v3113_v48 = vpop.f32.mrf.mxu0 }
0x100a   : > { %v2895_v48 = vld [vmem:[%s3803_s4 + $0x9] ss:$0 sm:$0xff] }
0x100b   : > { %v1968_v49 = vpop.f32.mrf.mxu0 }
0x100d   : > { %v3114_v50 = vpop.f32.mrf.mxu0 }
0x1058   : > { %v2057_v51 = vpop.f32.mrf.mxu0 }
0x105a   : > { %v3125_v52 = vpop.f32.mrf.mxu0 }
0x105c   : > { %v2011_v53 = vpop.f32.mrf.mxu1  ;;  %v2060_v54 = vpop.f32.mrf.mxu0 }
0x105d   : > { %2127 = vxpose.xlu0.b32.start.end [1/1] (short) (narrow) %v2011_v53, 8 }
0x105e   : > { %v3119_v55 = vpop.f32.mrf.mxu1  ;;  %v3126_v56 = vpop.f32.mrf.mxu0 }
0x1060   : > { %v2014_v27 = vpop.f32.mrf.mxu1 }
0x1061   : > { %2159 = vxpose.xlu0.b32.start.end [1/1] (short) (narrow) %v2057_v51, 8 }
0x1062   : > { %v3120_v57 = vpop.f32.mrf.mxu1 }
0x107b   : > { %v2079_v59 = vpop.trf.xlu0 }
0x1084   : > { %v2111_v61 = vpop.trf.xlu1 }
0x10d9   : > { %v2143_v60 = vpop.trf.xlu0 }
0x10da   : > { %v2191_v63 = vcombine.low %v2079_v59, %v2143_v60  ;;  %v2192_v0 = vcombine.high %v2079_v59, %v2143_v60 }
0x10dc   : > { %v2199_v3 = vrot.slane %v2191_v63, %v3475_v4  ;;  %v2206_v8 = vrot.slane %v2192_v0, %v3475_v4 }
0x10dd   : > { %v2175_v5 = vpop.trf.xlu0 }
0x10de   : > { %v2207_v6 = vcombine.low %v2111_v61, %v2175_v5  ;;  %v2208_v7 = vcombine.high %v2111_v61, %v2175_v5  ;;  %v3207_v61 = vld [vmem:[%s3802_s3 + $0x78] sm:$0xff]  }
0x10df   : > { %3136 = vmatpush3.bf16.msra.mxu0 %v3207_v61 }
0x10e0   : > { %v2215_v9 = vrot.slane %v2207_v6, %v3475_v4  ;;  %v2222_v11 = vrot.slane %v2208_v7, %v3475_v4  ;;  %3137 = vmatprep.subr.bf16.mxu0 %v3290_v1  ;;  %v2899_v6 = vld [vmem:[%s3803_s4 + $0xa] ss:$0 sm:$0xff] }
0x10e2   : > { %v2223_v16 = vcombine.low %v2199_v3, %v2215_v9  ;;  %v2224_v18 = vcombine.high %v2199_v3, %v2215_v9  ;;  %v2239_v19 = vcombine.low %v2206_v8, %v2222_v11  ;;  %v2240_v13 = vcombine.high %v2206_v8, %v2222_v11  ;;  %v2900_v8 = vld [vmem:[%s3803_s4 + $0xb] ss:$0 sm:$0xff] }
0x10e4   : > { %v2231_v20 = vrot.slane %v2223_v16, %v3478_v10  ;;  %v2238_v14 = vrot.slane %v2224_v18, %v3478_v10  ;;  %v2247_v21 = vrot.slane %v2239_v19, %v3478_v10  ;;  %v2254_v22 = vrot.slane %v2240_v13, %v3478_v10  ;;  %v3209_v16 = vld [vmem:[%s3802_s3 + $0x98] sm:$0xff]   ;;  %v3210_v18 = vld [vmem:[%s3802_s3 + $0x90] sm:$0xff]   ;;  %v3211_v19 = vld [vmem:[%s3802_s3 + $0x88] sm:$0xff]  }
0x10e5   : > { %v3212_v13 = vld [vmem:[%s3802_s3 + $0x80] sm:$0xff]  }
0x10e6   : > { %v2259_v17 = vcombine.low %v2231_v20, %v2238_v14  ;;  %v2893_v24 = vcombine.high %v2231_v20, %v2238_v14  ;;  %v2275_v15 = vcombine.low %v2247_v21, %v2254_v22  ;;  %v2894_v25 = vcombine.high %v2247_v21, %v2254_v22  ;;  %v2901_v20 = vld [vmem:[%s3803_s4 + $0xc] ss:$0 sm:$0xff] }
0x10e8   : > { %v2266_v26 = vrot.slane %v2259_v17, %v3475_v4  ;;  %v2274_v28 = vrot.slane %v2893_v24, %v3475_v4  ;;  %v2282_v29 = vrot.slane %v2275_v15, %v3475_v4  ;;  %v2290_v30 = vrot.slane %v2894_v25, %v3475_v4 }
0x10ea   : > { %v2292_v31 = vcombine.high %v2266_v26, %v2274_v28  ;;  %v2308_v32 = vcombine.high %v2282_v29, %v2290_v30  ;;  %v2291_v33 = vcombine.low %v2266_v26, %v2274_v28  ;;  %v2307_v34 = vcombine.low %v2282_v29, %v2290_v30 }
0x10ec   : > { %v2306_v35 = vrot.slane %v2292_v31, %v3478_v10  ;;  %v2322_v36 = vrot.slane %v2308_v32, %v3478_v10  ;;  %v2299_v37 = vrot.slane %v2291_v33, %v3478_v10  ;;  %v2315_v38 = vrot.slane %v2307_v34, %v3478_v10  ;;  %v2905_v34 = vld [vmem:[%s3803_s4 + $0xd] ss:$0 sm:$0xff] }
0x10ee   : > { %v2325_v39 = vcombine.low %v2306_v35, %v2322_v36  ;;  %v2324_v40 = vcombine.high %v2299_v37, %v2315_v38  ;;  %v2323_v41 = vcombine.low %v2299_v37, %v2315_v38  ;;  %v2326_v4 = vcombine.high %v2306_v35, %v2322_v36 }
0x10f0   : > { %2332 = vrot.lane.b32.xlu0 %v2325_v39, %s3299_s22  ;;  %2328 = vrot.lane.b32.xlu1 %v2324_v40, %s3300_s24 }
0x10f4   : > { %2336 = vrot.lane.b32.xlu1 %v2326_v4, %s3301_s25 }
0x1162   : > { %v2329_v42 = vpop.permute.xlu1 %2328  ;;  %v2333_v43 = vpop.permute.xlu0 %2332 }
0x1163   : > { %v2339_v44 = vsel %vm373_vm3, %v2323_v41, %v2329_v42 }
0x1164   : > { %v2340_v46 = vsel %vm1144_vm4, %v2339_v44, %v2333_v43 }
0x1166   : > { %v2337_v45 = vpop.permute.xlu1 %2336 }
0x1167   : > { %v2341_v47 = vsel %vm1146_vm5, %v2340_v46, %v2337_v45  ;;  %v3213_v46 = vld [vmem:[%s3802_s3 + $0xa8] sm:$0xff]  }
0x1168   : > { %v2342_v10 = vpack.c.bf16 %v2341_v47, %v2341_v47  ;;  %v3214_v47 = vld [vmem:[%s3802_s3 + $0xa0] sm:$0xff]  }
0x116a   : > { %3132 = vmatmul.mubr.msk.bf16.vlgmr.msra.gmra.mxu1 %vm245_vm1, %v2342_v10 }
0x116b   : > { %3151 = vmatprep.mubr.msk.bf16.mxu1 %vm3291_vm0, %v3290_v1  ;;  %3144 = vmatpush3.bf16.msra.mxu1 %v3209_v16 }
0x116c   : > { %3145 = vmatprep.subr.bf16.mxu1 %v3290_v1 }
0x116f   : > { %3146 = vmatpush3.bf16.msra.mxu1 %v3210_v18 }
0x1170   : > { %3147 = vmatprep.subr.bf16.mxu1 %v3290_v1 }
0x1173   : > { %3148 = vmatpush3.bf16.msra.mxu1 %v3211_v19 }
0x1174   : > { %3149 = vmatprep.subr.bf16.mxu1 %v3290_v1 }
0x1177   : > { %3150 = vmatpush3.bf16.msra.mxu1 %v3212_v13 }
0x122a   : > { %v2401_v49 = vpop.f32.mrf.mxu1 }
0x122b   : > { %v2402_v50 = vadd.f32 %v2895_v48, %v2401_v49 }
0x122c   : > { %v3133_v51 = vpop.f32.mrf.mxu1 }
0x122d   : > { %v2407_v52 = vadd.f32 %v2402_v50, %v3577_v2  ;;  %v3208_v2 = vld [vmem:[%s3802_s3 + $0x70] sm:$0xff]   ;;  %v2911_v50 = vld [vmem:[%s3803_s4 + $0xe] ss:$0 sm:$0xff] }
0x122e   : > { %v2404_v53 = vpop.f32.mrf.mxu1  ;;  %3138 = vmatpush3.bf16.msra.mxu0 %v3208_v2 }
0x122f   : > { %v2410_v54 = vsel %vm245_vm1, %v2407_v52, 0.0  ;;  %3155 = vmatprep.subr.bf16.mxu0 %v3290_v1  ;;  %v2912_v53 = vld [vmem:[%s3803_s4 + $0xf] ss:$0 sm:$0xff] }
0x1230   : > { %2411 = vadd.xlane.f32.xlu1 %v2410_v54  ;;  %v3134_v55 = vpop.f32.mrf.mxu1 }
0x12b9   : > { %v2412_v56 = vpop.xlane.xlu1 %2411 }
0x12ba   : > { %v2413_v27 = vmul.f32 0.03125, %v2412_v56 }
0x12bc   : > { %v2414_v57 = vsub.f32 %v2407_v52, %v2413_v27 }
0x12be   : > { %v2415_v59 = vmul.f32 %v2414_v57, %v2414_v57  ;;  %v2424_v7 = vmul.f32 %v2899_v6, %v2414_v57  ;;  %v3216_v6 = vld [vmem:[%s3802_s3 + $0xb0] sm:$0xff]  }
0x12c0   : > { %v2416_v60 = vsel %vm245_vm1, %v2415_v59, 0.0 }
0x12c1   : > { %2417 = vadd.xlane.f32.xlu0 %v2416_v60 }
0x134a   : > { %v2418_v63 = vpop.xlane.xlu0 %2417 }
0x134b   : > { %v2419_v0 = vmul.f32 0.03125, %v2418_v63 }
0x134d   : > { %v2425_v5 = vadd.f32 1e-06, %v2419_v0 }
0x134f   : > { %3255 = vrsqrt.f32 %v2425_v5  ;;  %v3215_v5 = vld [vmem:[%s3802_s3 + $0xb8] sm:$0xff]  }
0x135c   : > { %v3256_v3 = vpop.eup %3255 }
0x135d   : > { %v2427_v9 = vmul.f32 %v3256_v3, %v2424_v7  ;;  %v2628_v7 = vld [vmem:[%s3803_s4 + $0x10] sm:$0x1] }
0x135f   : > { %v2432_v11 = vadd.f32 %v2900_v8, %v2427_v9 }
0x1361   : > { %v2433_v12 = vpack.c.bf16 %v2432_v11, %v2432_v11 }
0x1363   : > { %3140 = vmatmul.mubr.msk.bf16.vlgmr.msra.gmra.mxu0 %vm245_vm1, %v2433_v12 }
0x1364   : > { %3159 = vmatprep.mubr.msk.bf16.mxu0 %vm3291_vm0, %v3290_v1  ;;  %3156 = vmatpush3.bf16.msra.mxu0 %v3213_v46 }
0x1365   : > { %3157 = vmatprep.subr.bf16.mxu0 %v3290_v1 }
0x1368   : > { %3158 = vmatpush3.bf16.msra.mxu0 %v3214_v47 }
0x1369   : > { %3163 = vmatprep.subr.bf16.mxu0 %v3290_v1 }
0x1423   : > { %v2492_v14 = vpop.f32.mrf.mxu0 }
0x1424   : > { %v2493_v21 = vadd.f32 %v2901_v20, %v2492_v14 }
0x1425   : > { %v3141_v22 = vpop.f32.mrf.mxu0 }
0x1426   : > { %v2499_v23 = vmul.f32 %v2493_v21, %v2493_v21  ;;  %v2498_v30 = vmul.f32 0.5, %v2493_v21 }
0x1427   : > { %v2495_v17 = vpop.f32.mrf.mxu0 }
0x1428   : > { %v2500_v24 = vmul.f32 %v2499_v23, %v2493_v21 }
0x1429   : > { %v3142_v15 = vpop.f32.mrf.mxu0 }
0x142a   : > { %v2501_v25 = vmul.f32 0.044715, %v2500_v24 }
0x142c   : > { %v2502_v26 = vadd.f32 %v2501_v25, %v2493_v21 }
0x142e   : > { %v2503_v28 = vmul.f32 0.7978846, %v2502_v26 }
0x1430   : > { %3257 = vtanh.f32 %v2503_v28 }
0x143d   : > { %v3258_v29 = vpop.eup %3257 }
0x143e   : > { %v2505_v31 = vadd.f32 1.0, %v3258_v29  ;;  %v2762_v29 = vand.u32 127, %v1000_v58 }
0x1440   : > { %v2506_v32 = vmul.f32 %v2505_v31, %v2498_v30  ;;  %v2763_v31 = vstv %s2760_s30  ;;  %vm2772_vm10 = vcmp.eq.s32.totalorder %v2762_v29, 4 }
0x1441   : > { %vm2764_vm8 = vcmp.eq.s32.totalorder %v2762_v29, %v2763_v31 }
0x1442   : > { %v2507_v33 = vpack.c.bf16 %v2506_v32, %v2506_v32 }
0x1444   : > { %3152 = vmatmul.mubr.msk.bf16.vlgmr.msra.gmra.mxu1 %vm1352_vm6, %v2507_v33 }
0x1504   : > { %v2582_v35 = vpop.f32.mrf.mxu1 }
0x1505   : > { %v2583_v36 = vadd.f32 %v2905_v34, %v2582_v35 }
0x1506   : > { %v3153_v37 = vpop.f32.mrf.mxu1 }
0x1507   : > { %v2588_v38 = vadd.f32 %v2583_v36, %v2432_v11  ;;  %v2776_v36 = vsub.s32 0, %v3472_v62 }
0x1508   : > { %v2585_v39 = vpop.f32.mrf.mxu1 }
0x1509   : > { %v2591_v40 = vsel %vm245_vm1, %v2588_v38, 0.0 }
0x150a   : > { %2592 = vadd.xlane.f32.xlu1 %v2591_v40  ;;  %v3154_v41 = vpop.f32.mrf.mxu1 }
0x1593   : > { %v2593_v4 = vpop.xlane.xlu1 %2592 }
0x1594   : > { %v2594_v42 = vmul.f32 0.03125, %v2593_v4 }
0x1596   : > { %v2595_v43 = vsub.f32 %v2588_v38, %v2594_v42 }
0x1598   : > { %v2596_v44 = vmul.f32 %v2595_v43, %v2595_v43  ;;  %v2605_v51 = vmul.f32 %v2911_v50, %v2595_v43 }
0x159a   : > { %v2597_v45 = vsel %vm245_vm1, %v2596_v44, 0.0 }
0x159b   : > { %2598 = vadd.xlane.f32.xlu0 %v2597_v45 }
0x1624   : > { %v2599_v10 = vpop.xlane.xlu0 %2598 }
0x1625   : > { %v2600_v48 = vmul.f32 0.03125, %v2599_v10 }
0x1627   : > { %v2606_v49 = vadd.f32 1e-06, %v2600_v48 }
0x1629   : > { %3259 = vrsqrt.f32 %v2606_v49 }
0x1636   : > { %v3260_v52 = vpop.eup %3259 }
0x1637   : > { %v2608_v54 = vmul.f32 %v3260_v52, %v2605_v51 }
0x1639   : > { %v2613_v55 = vadd.f32 %v2912_v53, %v2608_v54 }
0x163b   : > { %v2614_v56 = vsel %vm245_vm1, %v2613_v55, 0.0 }
0x163c   : > { %v2615_v27 = vrot.slane %v2614_v56, 4 }
0x163e   : > { %v2616_v57 = vadd.f32 %v2615_v27, %v2614_v56 }
0x1640   : > { %v2617_v59 = vrot.slane %v2616_v57, 2 }
0x1642   : > { %v2618_v60 = vadd.f32 %v2617_v59, %v2616_v57 }
0x1644   : > { %v2619_v61 = vrot.slane %v2618_v60, 1 }
0x1646   : > { %v2620_v2 = vadd.f32 %v2619_v61, %v2618_v60 }
0x1648   : > { %v2622_v63 = vmul.f32 0.125, %v2620_v2 }
0x164a   : > { %v2623_v0 = vpack.c.bf16 %v2622_v63, %v2622_v63 }
0x164c   : > { %3160 = vmatmul.mubr.msk.bf16.vlgmr.msra.gmra.mxu0 %vm245_vm1, %v2623_v0 }
0x164d   : > { %3167 = vmatprep.mubr.msk.bf16.mxu0 %vm3291_vm0, %v3290_v1  ;;  %3164 = vmatpush3.bf16.msra.mxu0 %v3215_v5 }
0x164e   : > { %3165 = vmatprep.subr.bf16.mxu0 %v3290_v1  ;;  %v2690_v1 = vld [vmem:[%s3803_s4 + $0x11] sm:$0x1] }
0x1651   : > { %3166 = vmatpush3.bf16.msra.mxu0 %v3216_v6 }
0x170c   : > { %v2678_v3 = vpop.f32.mrf.mxu0 }
0x170d   : > { %v2679_v8 = vadd.f32 %v2678_v3, %v2628_v7 }
0x170e   : > { %v3161_v9 = vpop.f32.mrf.mxu0 }
0x170f   : > { %3261 = vtanh.f32 %v2679_v8 }
0x1710   : > { %v2681_v11 = vpop.f32.mrf.mxu0 }
0x1712   : > { %v3162_v12 = vpop.f32.mrf.mxu0 }
0x171c   : > { %v3262_v16 = vpop.eup %3261 }
0x171d   : > { %v2685_v18 = vpack.c.bf16 %v3262_v16, %v3262_v16 }
0x171f   : > { %3168 = vmatmul.mubr.msk.bf16.vlgmr.msra.gmra.mxu0 %vm245_vm1, %v2685_v18 }
0x17df   : > { %v2740_v19 = vpop.f32.mrf.mxu0 }
0x17e0   : > { %v2741_v13 = vadd.f32 %v2740_v19, %v2690_v1 }
0x17e1   : > { %v3169_v20 = vpop.f32.mrf.mxu0 }
0x17e2   : > { %v2747_v14 = vsel %vm2746_vm7, %v2741_v13, -inf  ;;  %v2771_v39 = vsel %vm2770_vm9, %v2741_v13, 0.0 }
0x17e3   : > { %2748 = vmax.xlane.f32.xlu1 %v2747_v14  ;;  %v2743_v21 = vpop.f32.mrf.mxu0 }
0x17e5   : > { %v3170_v22 = vpop.f32.mrf.mxu0 }
0x186c   : > { %v2749_v23 = vpop.xlane.xlu1 %2748 }
0x186d   : > { %v2750_v17 = vsub.f32 %v2741_v13, %v2749_v23 }
0x186f   : > { %v2751_v24 = vmul.f32 1.442695, %v2750_v17 }
0x1871   : > { %3263 = vpow2.f32 %v2751_v24 }
0x187e   : > { %v3264_v15 = vpop.eup %3263 }
0x187f   : > { %v2753_v25 = vsel %vm2746_vm7, %v3264_v15, 0.0 }
0x1880   : > { %2754 = vadd.xlane.f32.xlu0 %v2753_v25 }
0x1909   : > { %v2755_v26 = vpop.xlane.xlu0 %2754 }
0x190a   : > { %3265 = vlog2.f32 %v2755_v26 }
0x1917   : > { %v3266_v28 = vpop.eup %3265 }
0x1918   : > { %v2757_v30 = vmul.f32 0.6931472, %v3266_v28 }
0x191a   : > { %v2758_v32 = vadd.f32 %v2757_v30, %v2749_v23 }
0x191c   : > { %v2759_v33 = vsub.f32 %v2741_v13, %v2758_v32 }
0x191e   : > { %v2765_v34 = vsel %vm2764_vm8, %v2759_v33, 0.0 }
0x191f   : > { %v2766_v35 = vsel %vm2746_vm7, %v2765_v34, 0.0 }
0x1920   : > { %2767 = vadd.xlane.f32.xlu1 %v2766_v35 }
0x19a9   : > { %v2768_v37 = vpop.xlane.xlu1 %2767 }
0x19aa   : > { %v2769_v38 = vsub.f32 0.0, %v2768_v37 }
0x19ac   : > { %v2773_v58 = vsel %vm2772_vm10, %v2769_v38, %v2771_v39 }
0x19ad   : > { %v2777_v40 = vrot.slane %v2773_v58, %v2776_v36 }
0x19af   : > { %2778 = vst [vmem:[%s213_s10] sm:$0xff] %v2777_v40 }
0x19b0 PF: > { %s21_s23 = sadd.s32 1, %s3287_s23  }
0x19b1   : > { %p18_p9 = scmp.ge.s32.totalorder %s21_s23, 4  }
0x19b3   :  { %20 = sbr.rel (!%p18_p9) target bundleno = 16 (0x10), region = 69 }

</bundles_post_ra>
